<compile_context>
chip_gen: v7x
topology: tpu7x:2x2x1
jax: 0.10.0
libtpu: 0.0.40
codegen_flags: <defaults>
</compile_context>

<pallas_src>
import functools
import math

import jax
import jax.numpy as jnp
from jax import lax
from jax.experimental import pallas as pl
from jax.experimental.pallas import tpu as pltpu


def _silu(x):
    return x * (1.0 / (1.0 + jnp.exp(-x)))


def _softplus(x):
    # matches torch.nn.functional.softplus(beta=1, threshold=20)
    safe = jnp.minimum(x, 20.0)
    return jnp.where(x > 20.0, x, jnp.log1p(jnp.exp(safe)))


def _mamba_kernel(d_state, d_conv, d_inner, unroll,
                  x_ref, w_in_ref, w_conv_ref, w_xproj_ref, b_dt_ref,
                  a_neg_ref, d_ref, w_out_ref,
                  out_ref,
                  h_s, tail_s, xpad_s, da_s, ou_s):
    Lc = x_ref.shape[1]
    T = da_s.shape[0]
    n_sub = Lc // T
    chunk = pl.program_id(1)

    # reset carried state at the first sequence chunk of each batch element
    @pl.when(chunk == 0)
    def _():
        h_s[...] = jnp.zeros_like(h_s)
        tail_s[...] = jnp.zeros_like(tail_s)

    x = x_ref[0]                                            # [Lc, d_model] bf16

    # fused in_proj (one lane-dense bf16 matmul), split into x / z branches
    xz = jnp.dot(x, w_in_ref[...], preferred_element_type=jnp.float32)
    x_in = xz[:, :d_inner]                                  # [Lc, d_inner]
    z = xz[:, d_inner:]                                     # [Lc, d_inner]

    # causal depthwise conv1d via padded scratch + static sublane slices (VPU).
    # xpad rows [0, d_conv-1) hold the previous chunk's tail (zeros at chunk 0).
    xpad_s[pl.ds(0, d_conv - 1), :] = tail_s[...]
    xpad_s[pl.ds(d_conv - 1, Lc), :] = x_in
    tail_s[...] = x_in[Lc - (d_conv - 1):, :]               # carry to next chunk
    acc = xpad_s[pl.ds(0, Lc), :] * w_conv_ref[pl.ds(0, 1), :]
    for k in range(1, d_conv):
        acc = acc + xpad_s[pl.ds(k, Lc), :] * w_conv_ref[pl.ds(k, 1), :]
    xc = _silu(acc)                                         # [Lc, d_inner] f32

    # fused x_proj + dt_proj: columns packed [dt_full | B | C]; dt is lane dense
    xdbl = jnp.dot(xc.astype(jnp.bfloat16), w_xproj_ref[...],
                   preferred_element_type=jnp.float32)
    dt = _softplus(xdbl[:, :d_inner] + b_dt_ref[...])       # [Lc, d_inner]
    b_mat = xdbl[:, d_inner:d_inner + d_state]              # [Lc, d_state]
    c_mat = xdbl[:, d_inner + d_state:d_inner + 2 * d_state]  # [Lc, d_state]

    a_neg = a_neg_ref[...]            # [d_state, d_inner]; -exp(A_log) host-side
    u = xc * dt                       # [Lc, d_inner]

    # selective scan, inner-tiled over T rows so da/ou scratch is VMEM-bounded
    y_parts = []
    for blk in range(n_sub):                                # static tiling loop
        s0 = blk * T
        dt_t = dt[s0:s0 + T]                                # [T, d_inner]
        da_s[...] = jnp.exp(a_neg[None, :, :] * dt_t[:, None, :])   # [T,S,I] f32
        ou_s[...] = (b_mat[s0:s0 + T, :, None]
                     * u[s0:s0 + T, None, :]).astype(ou_s.dtype)    # [T,S,I] bf16

        def body(t, h):
            h_new = h * da_s[t] + ou_s[t]                   # f32 recurrence
            ou_s[t] = h_new.astype(ou_s.dtype)              # bf16 h history
            return h_new

        h_fin = lax.fori_loop(0, T, body, h_s[...], unroll=unroll)
        h_s[...] = h_fin                                    # carry across tiles/chunks

        # vectorized readout for the tile: y[t] = sum_s C[t,s] * h_t[s,:]
        y_parts.append(jnp.sum(ou_s[...].astype(jnp.float32)
                               * c_mat[s0:s0 + T, :, None], axis=1))
    y_scan = y_parts[0] if n_sub == 1 else jnp.concatenate(y_parts, axis=0)

    # D skip connection, silu(z) gating, out_proj
    y = (y_scan + xc * d_ref[...]) * _silu(z)
    out = jnp.dot(y.astype(jnp.bfloat16), w_out_ref[...],
                  preferred_element_type=jnp.float32)
    out_ref[0] = out.astype(out_ref.dtype)
    # TODO(synk): nn.Dropout(0.1) is identity in eval mode; training-mode dropout not implemented.


def prepare_kernel_params(params, d_state):
    """Fold dt_proj into x_proj, precompute -exp(A_log), cast big weights to bf16."""
    d_inner = params['w_in'].shape[1] // 2
    w_x = params['w_xproj']                          # [d_inner, dt_rank + 2*d_state]
    dt_rank = w_x.shape[1] - 2 * d_state
    w_dt_full = jnp.dot(w_x[:, :dt_rank], params['w_dt'])        # [d_inner, d_inner]
    w_xfused = jnp.concatenate([w_dt_full, w_x[:, dt_rank:]], axis=1)
    return {
        'w_in': params['w_in'].astype(jnp.bfloat16),
        'w_conv': params['w_conv'].astype(jnp.float32),
        'w_xproj': w_xfused.astype(jnp.bfloat16),
        'b_dt': params['b_dt'].astype(jnp.float32),
        'a_neg': (-jnp.exp(params['a_logT'])).astype(jnp.float32),
        'd': params['d'].astype(jnp.float32),
        'w_out': params['w_out'].astype(jnp.bfloat16),
    }


def _largest_divisor_leq(n, cap):
    for c in range(max(1, min(n, cap)), 0, -1):
        if n % c == 0:
            return c
    return 1


def spatial_mamba_block(x, params, d_state, d_conv, seq_chunk=None, scan_tile=None):
    batch, L, d_model = x.shape
    d_inner = params['w_in'].shape[1] // 2
    kp = prepare_kernel_params(params, d_state)

    # ---- VMEM-aware tile selection (v7x has 64 MiB/TC vs 128 MiB on v5e/v6e) ----
    try:
        info = pltpu.get_tpu_info()
        vmem_cap = int(getattr(info, 'vmem_capacity_bytes', 64 * 1024 * 1024))
    except Exception:
        vmem_cap = 64 * 1024 * 1024                  # conservative fallback
    vmem_limit = max(32 * 1024 * 1024, (vmem_cap * 3) // 4)
    w_bytes = sum(int(v.size) * v.dtype.itemsize for v in kp.values())
    budget = max(8 * 1024 * 1024, vmem_limit - w_bytes - (4 << 20))

    # sequence chunk length Lc
    Lc = seq_chunk if seq_chunk is not None else min(L, 512)
    if L % Lc != 0 or (Lc != L and Lc % 8 != 0):
        Lc = L  # TODO(synk): pad ragged sequence lengths instead of full-L fallback.

    def _chunk_act_bytes(lc):
        # chunk-wide f32 temporaries (xz/xc/dt/u/z/...) + double-buffered x/out blocks
        return lc * d_inner * 4 * 7 + 2 * lc * d_model * (2 + 4)

    while (Lc >= 16 and Lc % 16 == 0 and L % (Lc // 2) == 0
           and _chunk_act_bytes(Lc) > budget // 2):
        Lc //= 2
    assert Lc >= d_conv - 1, "sequence chunk must cover the conv receptive tail"
    n_chunks = L // Lc

    # scan inner tile T, bounded so da(f32)+ou(bf16) scratch fits the budget
    per_row_bytes = d_state * d_inner * (4 + 2)
    t_cap = max(8, (budget // 2) // per_row_bytes)
    if scan_tile is not None:
        T = scan_tile
        assert Lc % T == 0, "scan_tile must divide the sequence chunk"
    else:
        T = _largest_divisor_leq(Lc, min(Lc, 64, t_cap))

    # recurrence unroll, gated on d_inner to stay inside the 64-entry vreg file
    if d_inner <= 1024:
        unroll = 8
    elif d_inner <= 2048:
        unroll = 4
    else:
        unroll = 2
    while unroll > 1 and T % unroll != 0:
        unroll //= 2

    kernel = functools.partial(_mamba_kernel, d_state, d_conv, d_inner, unroll)

    weight_names = ['w_in', 'w_conv', 'w_xproj', 'b_dt', 'a_neg', 'd', 'w_out']
    in_specs = [pl.BlockSpec((1, Lc, d_model), lambda b, c: (b, c, 0))]
    for name in weight_names:
        in_specs.append(pl.BlockSpec(kp[name].shape, lambda b, c: (0, 0)))

    grid_spec = pltpu.PrefetchScalarGridSpec(
        num_scalar_prefetch=0,
        grid=(batch, n_chunks),
        in_specs=in_specs,
        out_specs=pl.BlockSpec((1, Lc, d_model), lambda b, c: (b, c, 0)),
        scratch_shapes=[
            pltpu.VMEM((d_state, d_inner), jnp.float32),            # h_s (carried)
            pltpu.VMEM((d_conv - 1, d_inner), jnp.float32),         # tail_s (carried)
            pltpu.VMEM((Lc + d_conv - 1, d_inner), jnp.float32),    # xpad_s
            pltpu.VMEM((T, d_state, d_inner), jnp.float32),         # da_s
            pltpu.VMEM((T, d_state, d_inner), jnp.bfloat16),        # ou_s / h history
        ],
    )
    return pl.pallas_call(
        kernel,
        out_shape=jax.ShapeDtypeStruct((batch, L, d_model), jnp.float32),
        grid_spec=grid_spec,
        compiler_params=pltpu.CompilerParams(
            dimension_semantics=("parallel", "arbitrary"),
            vmem_limit_bytes=int(vmem_limit)),
    )(x.astype(jnp.bfloat16), *[kp[n] for n in weight_names])


def init_params(key, d_model, d_state=16, d_conv=4, expand=2):
    """PyTorch-faithful parameters (float32, transposed for right-multiplication)."""
    d_inner = d_model * expand
    dt_rank = math.ceil(d_model / 16)
    ks = jax.random.split(key, 6)

    def lin(k, fan_in, shape):
        bound = 1.0 / math.sqrt(fan_in)
        return jax.random.uniform(k, shape, jnp.float32, -bound, bound)

    params = {
        # in_proj weight [2*d_inner, d_model] stored transposed; columns [x | z]
        'w_in': lin(ks[0], d_model, (d_model, 2 * d_inner)),
        # conv1d depthwise weight [d_inner, 1, d_conv] stored as [d_conv, d_inner]
        'w_conv': lin(ks[1], d_conv, (d_conv, d_inner)),
        # x_proj weight stored transposed; columns in torch split order [dt | B | C]
        'w_xproj': lin(ks[2], d_inner, (d_inner, dt_rank + 2 * d_state)),
        # dt_proj: weight [d_inner, dt_rank] stored transposed; bias [d_inner]
        'w_dt': lin(ks[3], dt_rank, (dt_rank, d_inner)),
        'b_dt': lin(ks[4], dt_rank, (1, d_inner)),
        # A_log = log(arange(1, d_state+1)) broadcast to [d_inner, d_state];
        # stored transposed as [d_state, d_inner]
        'a_logT': jnp.log(jnp.broadcast_to(
            jnp.arange(1, d_state + 1, dtype=jnp.float32)[:, None],
            (d_state, d_inner))),
        'd': jnp.ones((1, d_inner), jnp.float32),
        # out_proj weight [d_model, d_inner] stored transposed
        'w_out': lin(ks[5], d_inner, (d_inner, d_model)),
    }
    return params, dt_rank


def reference(x, params, d_state, d_conv, dt_rank):
    """Pure-JAX reference mirroring the PyTorch forward exactly (f32 params)."""
    B, L, d_model = x.shape
    d_inner = params['w_in'].shape[1] // 2
    xz = jnp.einsum('bld,de->ble', x, params['w_in'])
    x_in, z = xz[..., :d_inner], xz[..., d_inner:]
    xp = jnp.pad(x_in, ((0, 0), (d_conv - 1, 0), (0, 0)))
    xc = jnp.zeros_like(x_in)
    for k in range(d_conv):
        xc = xc + xp[:, k:k + L, :] * params['w_conv'][k][None, None, :]
    xc = xc * jax.nn.sigmoid(xc)
    x_dbl = jnp.einsum('bli,ie->ble', xc, params['w_xproj'])
    dt_low = x_dbl[..., :dt_rank]
    Bm = x_dbl[..., dt_rank:dt_rank + d_state]
    Cm = x_dbl[..., dt_rank + d_state:]
    dt = jnp.einsum('blr,ri->bli', dt_low, params['w_dt']) + params['b_dt'][None]
    dt = jnp.where(dt > 20.0, dt, jnp.log1p(jnp.exp(jnp.minimum(dt, 20.0))))
    A = -jnp.exp(params['a_logT'].T)          # [d_inner, d_state]
    Dv = params['d'][0]
    h = jnp.zeros((B, d_inner, d_state), jnp.float32)
    ys = []
    for t in range(L):
        dt_t = dt[:, t][..., None]
        B_t = Bm[:, t][:, None, :]
        C_t = Cm[:, t][:, None, :]
        x_t = xc[:, t][..., None]
        h = h * jnp.exp(A[None] * dt_t) + B_t * x_t * dt_t
        y_t = jnp.sum(C_t * h, axis=-1) + Dv * xc[:, t]
        ys.append(y_t)
    y_ssm = jnp.stack(ys, axis=1)
    y = y_ssm * (z * jax.nn.sigmoid(z))
    return jnp.einsum('bli,id->bld', y, params['w_out'])


if __name__ == "__main__":
    key = jax.random.PRNGKey(0)
    d_model, d_state, d_conv, expand = 32, 16, 4, 2
    B, L = 2, 32

    pkey, xkey = jax.random.split(key)
    params, dt_rank = init_params(pkey, d_model, d_state, d_conv, expand)
    x = jax.random.normal(xkey, (B, L, d_model), jnp.float32)

    # 2 sequence chunks x 2 scan sub-tiles: exercises the carried h / conv tail
    # across chunks AND the inner VMEM-bounded scan tiling.
    out = spatial_mamba_block(x, params, d_state, d_conv,
                              seq_chunk=16, scan_tile=8)
    out = jax.block_until_ready(out)

    ref = reference(x, params, d_state, d_conv, dt_rank)
    assert out.shape == (B, L, d_model)
    err = float(jnp.max(jnp.abs(out - ref)))
    assert bool(jnp.allclose(out, ref, atol=2e-2, rtol=2e-2)), f"max abs err {err}"
    print("KERNEL_OK")
</pallas_src>

<mosaic_0001>
module attributes {stable_mosaic.version = 11 : i64} {
  func.func @_mamba_kernel(%arg0: i32, %arg1: i32, %arg2: memref<1x16x32xbf16, #tpu.memory_space<vmem>>, %arg3: memref<32x128xbf16, #tpu.memory_space<vmem>>, %arg4: memref<4x64xf32, #tpu.memory_space<vmem>>, %arg5: memref<64x96xbf16, #tpu.memory_space<vmem>>, %arg6: memref<1x64xf32, #tpu.memory_space<vmem>>, %arg7: memref<16x64xf32, #tpu.memory_space<vmem>>, %arg8: memref<1x64xf32, #tpu.memory_space<vmem>>, %arg9: memref<64x32xbf16, #tpu.memory_space<vmem>>, %arg10: memref<1x16x32xf32, #tpu.memory_space<vmem>>, %arg11: memref<16x64xf32, #tpu.memory_space<vmem>>, %arg12: memref<3x64xf32, #tpu.memory_space<vmem>>, %arg13: memref<19x64xf32, #tpu.memory_space<vmem>>, %arg14: memref<8x16x64xf32, #tpu.memory_space<vmem>>, %arg15: memref<8x16x64xbf16, #tpu.memory_space<vmem>>) attributes {dimension_semantics = [#tpu.dimension_semantics<parallel>, #tpu.dimension_semantics<arbitrary>], iteration_bounds = array<i64: 2, 2>, scalar_prefetch = 0 : i64, scratch_operands = 5 : i64, tpu.core_type = #tpu.core_type<tc>, window_params = [{transform_indices = @transform_0, window_bounds = array<i64: 1, 16, 32>}, {pipeline_mode = #tpu.pipeline_mode<synchronous>, transform_indices = @transform_1, window_bounds = array<i64: 32, 128>}, {pipeline_mode = #tpu.pipeline_mode<synchronous>, transform_indices = @transform_2, window_bounds = array<i64: 4, 64>}, {pipeline_mode = #tpu.pipeline_mode<synchronous>, transform_indices = @transform_3, window_bounds = array<i64: 64, 96>}, {pipeline_mode = #tpu.pipeline_mode<synchronous>, transform_indices = @transform_4, window_bounds = array<i64: 1, 64>}, {pipeline_mode = #tpu.pipeline_mode<synchronous>, transform_indices = @transform_5, window_bounds = array<i64: 16, 64>}, {pipeline_mode = #tpu.pipeline_mode<synchronous>, transform_indices = @transform_6, window_bounds = array<i64: 1, 64>}, {pipeline_mode = #tpu.pipeline_mode<synchronous>, transform_indices = @transform_7, window_bounds = array<i64: 64, 32>}, {transform_indices = @transform_8, window_bounds = array<i64: 1, 16, 32>}]} {
    %c0_i32 = arith.constant 0 : i32
    %0 = arith.cmpi eq, %arg1, %c0_i32 : i32
    %1 = arith.extui %0 : i1 to i32
    %c0_i32_0 = arith.constant 0 : i32
    %2 = arith.cmpi ne, %1, %c0_i32_0 : i32
    scf.if %2 {
      %cst_183 = arith.constant 0.000000e+00 : f32
      %355 = vector.broadcast %cst_183 : f32 to vector<16x64xf32>
      %c0_184 = arith.constant 0 : index
      %c0_185 = arith.constant 0 : index
      %356 = vector.load %arg11[%c0_184, %c0_185] : memref<16x64xf32, #tpu.memory_space<vmem>>, vector<16x64xf32>
      tpu.vector_store %arg11[%c0_184, %c0_185], %355 {strides = array<i32>} : memref<16x64xf32, #tpu.memory_space<vmem>>, vector<16x64xf32>,
      %cst_186 = arith.constant 0.000000e+00 : f32
      %357 = vector.broadcast %cst_186 : f32 to vector<3x64xf32>
      %c0_187 = arith.constant 0 : index
      %c0_188 = arith.constant 0 : index
      %358 = vector.load %arg12[%c0_187, %c0_188] : memref<3x64xf32, #tpu.memory_space<vmem>>, vector<3x64xf32>
      tpu.vector_store %arg12[%c0_187, %c0_188], %357 {strides = array<i32>} : memref<3x64xf32, #tpu.memory_space<vmem>>, vector<3x64xf32>,
    } else {
    }
    %c0 = arith.constant 0 : index
    %c0_1 = arith.constant 0 : index
    %c0_2 = arith.constant 0 : index
    %3 = vector.load %arg2[%c0, %c0_1, %c0_2] : memref<1x16x32xbf16, #tpu.memory_space<vmem>>, vector<1x16x32xbf16>
    %4 = vector.shape_cast %3 : vector<1x16x32xbf16> to vector<16x32xbf16>
    %c0_3 = arith.constant 0 : index
    %c0_4 = arith.constant 0 : index
    %5 = vector.load %arg3[%c0_3, %c0_4] : memref<32x128xbf16, #tpu.memory_space<vmem>>, vector<32x128xbf16>
    %cst = arith.constant dense<0.000000e+00> : vector<16x128xf32>
    %6 = tpu.matmul %4, %5, %cst {dimension_numbers = #tpu.dot_dimension_numbers<[1], [0], [0], [1], [0, 0, 1, 1], [], []>} : vector<16x32xbf16>, vector<32x128xbf16>, vector<16x128xf32> -> vector<16x128xf32>
    %7 = vector.extract_strided_slice %6 {offsets = [0, 0], sizes = [16, 64], strides = [1, 1]} : vector<16x128xf32> to vector<16x64xf32>
    %8 = vector.extract_strided_slice %6 {offsets = [0, 64], sizes = [16, 64], strides = [1, 1]} : vector<16x128xf32> to vector<16x64xf32>
    %c0_5 = arith.constant 0 : index
    %c0_6 = arith.constant 0 : index
    %9 = vector.load %arg12[%c0_5, %c0_6] : memref<3x64xf32, #tpu.memory_space<vmem>>, vector<3x64xf32>
    %c0_7 = arith.constant 0 : index
    %c0_8 = arith.constant 0 : index
    %10 = vector.load %arg13[%c0_7, %c0_8] : memref<19x64xf32, #tpu.memory_space<vmem>>, vector<3x64xf32>
    tpu.vector_store %arg13[%c0_7, %c0_8], %9 {strides = array<i32>} : memref<19x64xf32, #tpu.memory_space<vmem>>, vector<3x64xf32>,
    %c3 = arith.constant 3 : index
    %c0_9 = arith.constant 0 : index
    %11 = vector.load %arg13[%c3, %c0_9] : memref<19x64xf32, #tpu.memory_space<vmem>>, vector<16x64xf32>
    tpu.vector_store %arg13[%c3, %c0_9], %7 {strides = array<i32>} : memref<19x64xf32, #tpu.memory_space<vmem>>, vector<16x64xf32>,
    %12 = vector.extract_strided_slice %7 {offsets = [13, 0], sizes = [3, 64], strides = [1, 1]} : vector<16x64xf32> to vector<3x64xf32>
    %c0_10 = arith.constant 0 : index
    %c0_11 = arith.constant 0 : index
    %13 = vector.load %arg12[%c0_10, %c0_11] : memref<3x64xf32, #tpu.memory_space<vmem>>, vector<3x64xf32>
    tpu.vector_store %arg12[%c0_10, %c0_11], %12 {strides = array<i32>} : memref<3x64xf32, #tpu.memory_space<vmem>>, vector<3x64xf32>,
    %c0_12 = arith.constant 0 : index
    %c0_13 = arith.constant 0 : index
    %14 = vector.load %arg13[%c0_12, %c0_13] : memref<19x64xf32, #tpu.memory_space<vmem>>, vector<16x64xf32>
    %c0_14 = arith.constant 0 : index
    %c0_15 = arith.constant 0 : index
    %15 = vector.load %arg4[%c0_14, %c0_15] : memref<4x64xf32, #tpu.memory_space<vmem>>, vector<1x64xf32>
    %16 = vector.broadcast %15 : vector<1x64xf32> to vector<16x64xf32>
    %17 = arith.mulf %14, %16 : vector<16x64xf32>
    %c1 = arith.constant 1 : index
    %c0_16 = arith.constant 0 : index
    %18 = vector.load %arg13[%c1, %c0_16] : memref<19x64xf32, #tpu.memory_space<vmem>>, vector<16x64xf32>
    %c1_17 = arith.constant 1 : index
    %c0_18 = arith.constant 0 : index
    %19 = vector.load %arg4[%c1_17, %c0_18] : memref<4x64xf32, #tpu.memory_space<vmem>>, vector<1x64xf32>
    %20 = vector.broadcast %19 : vector<1x64xf32> to vector<16x64xf32>
    %21 = arith.mulf %18, %20 : vector<16x64xf32>
    %22 = arith.addf %17, %21 : vector<16x64xf32>
    %c2 = arith.constant 2 : index
    %c0_19 = arith.constant 0 : index
    %23 = vector.load %arg13[%c2, %c0_19] : memref<19x64xf32, #tpu.memory_space<vmem>>, vector<16x64xf32>
    %c2_20 = arith.constant 2 : index
    %c0_21 = arith.constant 0 : index
    %24 = vector.load %arg4[%c2_20, %c0_21] : memref<4x64xf32, #tpu.memory_space<vmem>>, vector<1x64xf32>
    %25 = vector.broadcast %24 : vector<1x64xf32> to vector<16x64xf32>
    %26 = arith.mulf %23, %25 : vector<16x64xf32>
    %27 = arith.addf %22, %26 : vector<16x64xf32>
    %c3_22 = arith.constant 3 : index
    %c0_23 = arith.constant 0 : index
    %28 = vector.load %arg13[%c3_22, %c0_23] : memref<19x64xf32, #tpu.memory_space<vmem>>, vector<16x64xf32>
    %c3_24 = arith.constant 3 : index
    %c0_25 = arith.constant 0 : index
    %29 = vector.load %arg4[%c3_24, %c0_25] : memref<4x64xf32, #tpu.memory_space<vmem>>, vector<1x64xf32>
    %30 = vector.broadcast %29 : vector<1x64xf32> to vector<16x64xf32>
    %31 = arith.mulf %28, %30 : vector<16x64xf32>
    %32 = arith.addf %27, %31 : vector<16x64xf32>
    %cst_26 = arith.constant 0.000000e+00 : f32
    %33 = vector.broadcast %cst_26 : f32 to vector<16x64xf32>
    %34 = arith.subf %33, %32 : vector<16x64xf32>
    %35 = math.exp %34 : vector<16x64xf32>
    %cst_27 = arith.constant 1.000000e+00 : f32
    %36 = vector.broadcast %cst_27 : f32 to vector<16x64xf32>
    %37 = arith.addf %36, %35 : vector<16x64xf32>
    %cst_28 = arith.constant 1.000000e+00 : f32
    %38 = vector.broadcast %cst_28 : f32 to vector<16x64xf32>
    %39 = arith.divf %38, %37 : vector<16x64xf32>
    %40 = arith.mulf %32, %39 : vector<16x64xf32>
    %41 = arith.truncf %40 : vector<16x64xf32> to vector<16x64xbf16>
    %c0_29 = arith.constant 0 : index
    %c0_30 = arith.constant 0 : index
    %42 = vector.load %arg5[%c0_29, %c0_30] : memref<64x96xbf16, #tpu.memory_space<vmem>>, vector<64x96xbf16>
    %cst_31 = arith.constant dense<0.000000e+00> : vector<16x96xf32>
    %43 = tpu.matmul %41, %42, %cst_31 {dimension_numbers = #tpu.dot_dimension_numbers<[1], [0], [0], [1], [0, 0, 1, 1], [], []>} : vector<16x64xbf16>, vector<64x96xbf16>, vector<16x96xf32> -> vector<16x96xf32>
    %44 = vector.extract_strided_slice %43 {offsets = [0, 0], sizes = [16, 64], strides = [1, 1]} : vector<16x96xf32> to vector<16x64xf32>
    %c0_32 = arith.constant 0 : index
    %c0_33 = arith.constant 0 : index
    %45 = vector.load %arg6[%c0_32, %c0_33] : memref<1x64xf32, #tpu.memory_space<vmem>>, vector<1x64xf32>
    %46 = vector.broadcast %45 : vector<1x64xf32> to vector<16x64xf32>
    %47 = arith.addf %44, %46 : vector<16x64xf32>
    %cst_34 = arith.constant 2.000000e+01 : f32
    %48 = vector.broadcast %cst_34 : f32 to vector<16x64xf32>
    %49 = arith.minimumf %47, %48 : vector<16x64xf32>
    %cst_35 = arith.constant 2.000000e+01 : f32
    %50 = vector.broadcast %cst_35 : f32 to vector<16x64xf32>
    %51 = arith.cmpf ogt, %47, %50 : vector<16x64xf32>
    %52 = math.exp %49 : vector<16x64xf32>
    %53 = math.log1p %52 : vector<16x64xf32>
    %54 = arith.select %51, %47, %53 : vector<16x64xi1>, vector<16x64xf32>
    %55 = vector.extract_strided_slice %43 {offsets = [0, 64], sizes = [16, 16], strides = [1, 1]} : vector<16x96xf32> to vector<16x16xf32>
    %56 = vector.extract_strided_slice %43 {offsets = [0, 80], sizes = [16, 16], strides = [1, 1]} : vector<16x96xf32> to vector<16x16xf32>
    %c0_36 = arith.constant 0 : index
    %c0_37 = arith.constant 0 : index
    %57 = vector.load %arg7[%c0_36, %c0_37] : memref<16x64xf32, #tpu.memory_space<vmem>>, vector<16x64xf32>
    %58 = arith.mulf %40, %54 : vector<16x64xf32>
    %59 = vector.extract_strided_slice %54 {offsets = [0, 0], sizes = [8, 64], strides = [1, 1]} : vector<16x64xf32> to vector<8x64xf32>
    %60 = vector.shape_cast %57 : vector<16x64xf32> to vector<1x16x64xf32>
    %61 = vector.shape_cast %59 : vector<8x64xf32> to vector<8x1x64xf32>
    %62 = vector.broadcast %60 : vector<1x16x64xf32> to vector<8x16x64xf32>
    %63 = vector.broadcast %61 : vector<8x1x64xf32> to vector<8x16x64xf32>
    %64 = arith.mulf %62, %63 : vector<8x16x64xf32>
    %65 = math.exp %64 : vector<8x16x64xf32>
    %c0_38 = arith.constant 0 : index
    %c0_39 = arith.constant 0 : index
    %c0_40 = arith.constant 0 : index
    %66 = vector.load %arg14[%c0_38, %c0_39, %c0_40] : memref<8x16x64xf32, #tpu.memory_space<vmem>>, vector<8x16x64xf32>
    tpu.vector_store %arg14[%c0_38, %c0_39, %c0_40], %65 {strides = array<i32>} : memref<8x16x64xf32, #tpu.memory_space<vmem>>, vector<8x16x64xf32>,
    %67 = vector.extract_strided_slice %55 {offsets = [0, 0], sizes = [8, 16], strides = [1, 1]} : vector<16x16xf32> to vector<8x16xf32>
    %68 = vector.shape_cast %67 : vector<8x16xf32> to vector<8x16x1xf32>
    %69 = vector.extract_strided_slice %58 {offsets = [0, 0], sizes = [8, 64], strides = [1, 1]} : vector<16x64xf32> to vector<8x64xf32>
    %70 = vector.shape_cast %69 : vector<8x64xf32> to vector<8x1x64xf32>
    %71 = vector.broadcast %68 : vector<8x16x1xf32> to vector<8x16x64xf32>
    %72 = vector.broadcast %70 : vector<8x1x64xf32> to vector<8x16x64xf32>
    %73 = arith.mulf %71, %72 : vector<8x16x64xf32>
    %74 = arith.truncf %73 : vector<8x16x64xf32> to vector<8x16x64xbf16>
    %c0_41 = arith.constant 0 : index
    %c0_42 = arith.constant 0 : index
    %c0_43 = arith.constant 0 : index
    %75 = vector.load %arg15[%c0_41, %c0_42, %c0_43] : memref<8x16x64xbf16, #tpu.memory_space<vmem>>, vector<8x16x64xbf16>
    tpu.vector_store %arg15[%c0_41, %c0_42, %c0_43], %74 {strides = array<i32>} : memref<8x16x64xbf16, #tpu.memory_space<vmem>>, vector<8x16x64xbf16>,
    %c0_44 = arith.constant 0 : index
    %c0_45 = arith.constant 0 : index
    %76 = vector.load %arg11[%c0_44, %c0_45] : memref<16x64xf32, #tpu.memory_space<vmem>>, vector<16x64xf32>
    %c0_i32_46 = arith.constant 0 : i32
    %77 = arith.index_cast %c0_i32_46 : i32 to index
    %c0_47 = arith.constant 0 : index
    %c0_48 = arith.constant 0 : index
    %78 = vector.load %arg14[%77, %c0_47, %c0_48] : memref<8x16x64xf32, #tpu.memory_space<vmem>>, vector<1x16x64xf32>
    %79 = vector.shape_cast %78 : vector<1x16x64xf32> to vector<16x64xf32>
    %80 = arith.mulf %76, %79 : vector<16x64xf32>
    %81 = arith.index_cast %c0_i32_46 : i32 to index
    %c0_49 = arith.constant 0 : index
    %c0_50 = arith.constant 0 : index
    %82 = vector.load %arg15[%81, %c0_49, %c0_50] : memref<8x16x64xbf16, #tpu.memory_space<vmem>>, vector<1x16x64xbf16>
    %83 = vector.shape_cast %82 : vector<1x16x64xbf16> to vector<16x64xbf16>
    %84 = arith.extf %83 : vector<16x64xbf16> to vector<16x64xf32>
    %85 = arith.addf %80, %84 : vector<16x64xf32>
    %86 = arith.truncf %85 : vector<16x64xf32> to vector<16x64xbf16>
    %87 = arith.index_cast %c0_i32_46 : i32 to index
    %c0_51 = arith.constant 0 : index
    %c0_52 = arith.constant 0 : index
    %88 = vector.load %arg15[%87, %c0_51, %c0_52] : memref<8x16x64xbf16, #tpu.memory_space<vmem>>, vector<1x16x64xbf16>
    %89 = vector.shape_cast %88 : vector<1x16x64xbf16> to vector<16x64xbf16>
    %90 = vector.shape_cast %86 : vector<16x64xbf16> to vector<1x16x64xbf16>
    tpu.vector_store %arg15[%87, %c0_51, %c0_52], %90 {strides = array<i32>} : memref<8x16x64xbf16, #tpu.memory_space<vmem>>, vector<1x16x64xbf16>,
    %c1_i32 = arith.constant 1 : i32
    %91 = arith.index_cast %c1_i32 : i32 to index
    %c0_53 = arith.constant 0 : index
    %c0_54 = arith.constant 0 : index
    %92 = vector.load %arg14[%91, %c0_53, %c0_54] : memref<8x16x64xf32, #tpu.memory_space<vmem>>, vector<1x16x64xf32>
    %93 = vector.shape_cast %92 : vector<1x16x64xf32> to vector<16x64xf32>
    %94 = arith.mulf %85, %93 : vector<16x64xf32>
    %95 = arith.index_cast %c1_i32 : i32 to index
    %c0_55 = arith.constant 0 : index
    %c0_56 = arith.constant 0 : index
    %96 = vector.load %arg15[%95, %c0_55, %c0_56] : memref<8x16x64xbf16, #tpu.memory_space<vmem>>, vector<1x16x64xbf16>
    %97 = vector.shape_cast %96 : vector<1x16x64xbf16> to vector<16x64xbf16>
    %98 = arith.extf %97 : vector<16x64xbf16> to vector<16x64xf32>
    %99 = arith.addf %94, %98 : vector<16x64xf32>
    %100 = arith.truncf %99 : vector<16x64xf32> to vector<16x64xbf16>
    %101 = arith.index_cast %c1_i32 : i32 to index
    %c0_57 = arith.constant 0 : index
    %c0_58 = arith.constant 0 : index
    %102 = vector.load %arg15[%101, %c0_57, %c0_58] : memref<8x16x64xbf16, #tpu.memory_space<vmem>>, vector<1x16x64xbf16>
    %103 = vector.shape_cast %102 : vector<1x16x64xbf16> to vector<16x64xbf16>
    %104 = vector.shape_cast %100 : vector<16x64xbf16> to vector<1x16x64xbf16>
    tpu.vector_store %arg15[%101, %c0_57, %c0_58], %104 {strides = array<i32>} : memref<8x16x64xbf16, #tpu.memory_space<vmem>>, vector<1x16x64xbf16>,
    %c2_i32 = arith.constant 2 : i32
    %105 = arith.index_cast %c2_i32 : i32 to index
    %c0_59 = arith.constant 0 : index
    %c0_60 = arith.constant 0 : index
    %106 = vector.load %arg14[%105, %c0_59, %c0_60] : memref<8x16x64xf32, #tpu.memory_space<vmem>>, vector<1x16x64xf32>
    %107 = vector.shape_cast %106 : vector<1x16x64xf32> to vector<16x64xf32>
    %108 = arith.mulf %99, %107 : vector<16x64xf32>
    %109 = arith.index_cast %c2_i32 : i32 to index
    %c0_61 = arith.constant 0 : index
    %c0_62 = arith.constant 0 : index
    %110 = vector.load %arg15[%109, %c0_61, %c0_62] : memref<8x16x64xbf16, #tpu.memory_space<vmem>>, vector<1x16x64xbf16>
    %111 = vector.shape_cast %110 : vector<1x16x64xbf16> to vector<16x64xbf16>
    %112 = arith.extf %111 : vector<16x64xbf16> to vector<16x64xf32>
    %113 = arith.addf %108, %112 : vector<16x64xf32>
    %114 = arith.truncf %113 : vector<16x64xf32> to vector<16x64xbf16>
    %115 = arith.index_cast %c2_i32 : i32 to index
    %c0_63 = arith.constant 0 : index
    %c0_64 = arith.constant 0 : index
    %116 = vector.load %arg15[%115, %c0_63, %c0_64] : memref<8x16x64xbf16, #tpu.memory_space<vmem>>, vector<1x16x64xbf16>
    %117 = vector.shape_cast %116 : vector<1x16x64xbf16> to vector<16x64xbf16>
    %118 = vector.shape_cast %114 : vector<16x64xbf16> to vector<1x16x64xbf16>
    tpu.vector_store %arg15[%115, %c0_63, %c0_64], %118 {strides = array<i32>} : memref<8x16x64xbf16, #tpu.memory_space<vmem>>, vector<1x16x64xbf16>,
    %c3_i32 = arith.constant 3 : i32
    %119 = arith.index_cast %c3_i32 : i32 to index
    %c0_65 = arith.constant 0 : index
    %c0_66 = arith.constant 0 : index
    %120 = vector.load %arg14[%119, %c0_65, %c0_66] : memref<8x16x64xf32, #tpu.memory_space<vmem>>, vector<1x16x64xf32>
    %121 = vector.shape_cast %120 : vector<1x16x64xf32> to vector<16x64xf32>
    %122 = arith.mulf %113, %121 : vector<16x64xf32>
    %123 = arith.index_cast %c3_i32 : i32 to index
    %c0_67 = arith.constant 0 : index
    %c0_68 = arith.constant 0 : index
    %124 = vector.load %arg15[%123, %c0_67, %c0_68] : memref<8x16x64xbf16, #tpu.memory_space<vmem>>, vector<1x16x64xbf16>
    %125 = vector.shape_cast %124 : vector<1x16x64xbf16> to vector<16x64xbf16>
    %126 = arith.extf %125 : vector<16x64xbf16> to vector<16x64xf32>
    %127 = arith.addf %122, %126 : vector<16x64xf32>
    %128 = arith.truncf %127 : vector<16x64xf32> to vector<16x64xbf16>
    %129 = arith.index_cast %c3_i32 : i32 to index
    %c0_69 = arith.constant 0 : index
    %c0_70 = arith.constant 0 : index
    %130 = vector.load %arg15[%129, %c0_69, %c0_70] : memref<8x16x64xbf16, #tpu.memory_space<vmem>>, vector<1x16x64xbf16>
    %131 = vector.shape_cast %130 : vector<1x16x64xbf16> to vector<16x64xbf16>
    %132 = vector.shape_cast %128 : vector<16x64xbf16> to vector<1x16x64xbf16>
    tpu.vector_store %arg15[%129, %c0_69, %c0_70], %132 {strides = array<i32>} : memref<8x16x64xbf16, #tpu.memory_space<vmem>>, vector<1x16x64xbf16>,
    %c4_i32 = arith.constant 4 : i32
    %133 = arith.index_cast %c4_i32 : i32 to index
    %c0_71 = arith.constant 0 : index
    %c0_72 = arith.constant 0 : index
    %134 = vector.load %arg14[%133, %c0_71, %c0_72] : memref<8x16x64xf32, #tpu.memory_space<vmem>>, vector<1x16x64xf32>
    %135 = vector.shape_cast %134 : vector<1x16x64xf32> to vector<16x64xf32>
    %136 = arith.mulf %127, %135 : vector<16x64xf32>
    %137 = arith.index_cast %c4_i32 : i32 to index
    %c0_73 = arith.constant 0 : index
    %c0_74 = arith.constant 0 : index
    %138 = vector.load %arg15[%137, %c0_73, %c0_74] : memref<8x16x64xbf16, #tpu.memory_space<vmem>>, vector<1x16x64xbf16>
    %139 = vector.shape_cast %138 : vector<1x16x64xbf16> to vector<16x64xbf16>
    %140 = arith.extf %139 : vector<16x64xbf16> to vector<16x64xf32>
    %141 = arith.addf %136, %140 : vector<16x64xf32>
    %142 = arith.truncf %141 : vector<16x64xf32> to vector<16x64xbf16>
    %143 = arith.index_cast %c4_i32 : i32 to index
    %c0_75 = arith.constant 0 : index
    %c0_76 = arith.constant 0 : index
    %144 = vector.load %arg15[%143, %c0_75, %c0_76] : memref<8x16x64xbf16, #tpu.memory_space<vmem>>, vector<1x16x64xbf16>
    %145 = vector.shape_cast %144 : vector<1x16x64xbf16> to vector<16x64xbf16>
    %146 = vector.shape_cast %142 : vector<16x64xbf16> to vector<1x16x64xbf16>
    tpu.vector_store %arg15[%143, %c0_75, %c0_76], %146 {strides = array<i32>} : memref<8x16x64xbf16, #tpu.memory_space<vmem>>, vector<1x16x64xbf16>,
    %c5_i32 = arith.constant 5 : i32
    %147 = arith.index_cast %c5_i32 : i32 to index
    %c0_77 = arith.constant 0 : index
    %c0_78 = arith.constant 0 : index
    %148 = vector.load %arg14[%147, %c0_77, %c0_78] : memref<8x16x64xf32, #tpu.memory_space<vmem>>, vector<1x16x64xf32>
    %149 = vector.shape_cast %148 : vector<1x16x64xf32> to vector<16x64xf32>
    %150 = arith.mulf %141, %149 : vector<16x64xf32>
    %151 = arith.index_cast %c5_i32 : i32 to index
    %c0_79 = arith.constant 0 : index
    %c0_80 = arith.constant 0 : index
    %152 = vector.load %arg15[%151, %c0_79, %c0_80] : memref<8x16x64xbf16, #tpu.memory_space<vmem>>, vector<1x16x64xbf16>
    %153 = vector.shape_cast %152 : vector<1x16x64xbf16> to vector<16x64xbf16>
    %154 = arith.extf %153 : vector<16x64xbf16> to vector<16x64xf32>
    %155 = arith.addf %150, %154 : vector<16x64xf32>
    %156 = arith.truncf %155 : vector<16x64xf32> to vector<16x64xbf16>
    %157 = arith.index_cast %c5_i32 : i32 to index
    %c0_81 = arith.constant 0 : index
    %c0_82 = arith.constant 0 : index
    %158 = vector.load %arg15[%157, %c0_81, %c0_82] : memref<8x16x64xbf16, #tpu.memory_space<vmem>>, vector<1x16x64xbf16>
    %159 = vector.shape_cast %158 : vector<1x16x64xbf16> to vector<16x64xbf16>
    %160 = vector.shape_cast %156 : vector<16x64xbf16> to vector<1x16x64xbf16>
    tpu.vector_store %arg15[%157, %c0_81, %c0_82], %160 {strides = array<i32>} : memref<8x16x64xbf16, #tpu.memory_space<vmem>>, vector<1x16x64xbf16>,
    %c6_i32 = arith.constant 6 : i32
    %161 = arith.index_cast %c6_i32 : i32 to index
    %c0_83 = arith.constant 0 : index
    %c0_84 = arith.constant 0 : index
    %162 = vector.load %arg14[%161, %c0_83, %c0_84] : memref<8x16x64xf32, #tpu.memory_space<vmem>>, vector<1x16x64xf32>
    %163 = vector.shape_cast %162 : vector<1x16x64xf32> to vector<16x64xf32>
    %164 = arith.mulf %155, %163 : vector<16x64xf32>
    %165 = arith.index_cast %c6_i32 : i32 to index
    %c0_85 = arith.constant 0 : index
    %c0_86 = arith.constant 0 : index
    %166 = vector.load %arg15[%165, %c0_85, %c0_86] : memref<8x16x64xbf16, #tpu.memory_space<vmem>>, vector<1x16x64xbf16>
    %167 = vector.shape_cast %166 : vector<1x16x64xbf16> to vector<16x64xbf16>
    %168 = arith.extf %167 : vector<16x64xbf16> to vector<16x64xf32>
    %169 = arith.addf %164, %168 : vector<16x64xf32>
    %170 = arith.truncf %169 : vector<16x64xf32> to vector<16x64xbf16>
    %171 = arith.index_cast %c6_i32 : i32 to index
    %c0_87 = arith.constant 0 : index
    %c0_88 = arith.constant 0 : index
    %172 = vector.load %arg15[%171, %c0_87, %c0_88] : memref<8x16x64xbf16, #tpu.memory_space<vmem>>, vector<1x16x64xbf16>
    %173 = vector.shape_cast %172 : vector<1x16x64xbf16> to vector<16x64xbf16>
    %174 = vector.shape_cast %170 : vector<16x64xbf16> to vector<1x16x64xbf16>
    tpu.vector_store %arg15[%171, %c0_87, %c0_88], %174 {strides = array<i32>} : memref<8x16x64xbf16, #tpu.memory_space<vmem>>, vector<1x16x64xbf16>,
    %c7_i32 = arith.constant 7 : i32
    %175 = arith.index_cast %c7_i32 : i32 to index
    %c0_89 = arith.constant 0 : index
    %c0_90 = arith.constant 0 : index
    %176 = vector.load %arg14[%175, %c0_89, %c0_90] : memref<8x16x64xf32, #tpu.memory_space<vmem>>, vector<1x16x64xf32>
    %177 = vector.shape_cast %176 : vector<1x16x64xf32> to vector<16x64xf32>
    %178 = arith.mulf %169, %177 : vector<16x64xf32>
    %179 = arith.index_cast %c7_i32 : i32 to index
    %c0_91 = arith.constant 0 : index
    %c0_92 = arith.constant 0 : index
    %180 = vector.load %arg15[%179, %c0_91, %c0_92] : memref<8x16x64xbf16, #tpu.memory_space<vmem>>, vector<1x16x64xbf16>
    %181 = vector.shape_cast %180 : vector<1x16x64xbf16> to vector<16x64xbf16>
    %182 = arith.extf %181 : vector<16x64xbf16> to vector<16x64xf32>
    %183 = arith.addf %178, %182 : vector<16x64xf32>
    %184 = arith.truncf %183 : vector<16x64xf32> to vector<16x64xbf16>
    %185 = arith.index_cast %c7_i32 : i32 to index
    %c0_93 = arith.constant 0 : index
    %c0_94 = arith.constant 0 : index
    %186 = vector.load %arg15[%185, %c0_93, %c0_94] : memref<8x16x64xbf16, #tpu.memory_space<vmem>>, vector<1x16x64xbf16>
    %187 = vector.shape_cast %186 : vector<1x16x64xbf16> to vector<16x64xbf16>
    %188 = vector.shape_cast %184 : vector<16x64xbf16> to vector<1x16x64xbf16>
    tpu.vector_store %arg15[%185, %c0_93, %c0_94], %188 {strides = array<i32>} : memref<8x16x64xbf16, #tpu.memory_space<vmem>>, vector<1x16x64xbf16>,
    %c8_i32 = arith.constant 8 : i32
    %c0_95 = arith.constant 0 : index
    %c0_96 = arith.constant 0 : index
    %189 = vector.load %arg11[%c0_95, %c0_96] : memref<16x64xf32, #tpu.memory_space<vmem>>, vector<16x64xf32>
    tpu.vector_store %arg11[%c0_95, %c0_96], %183 {strides = array<i32>} : memref<16x64xf32, #tpu.memory_space<vmem>>, vector<16x64xf32>,
    %c0_97 = arith.constant 0 : index
    %c0_98 = arith.constant 0 : index
    %c0_99 = arith.constant 0 : index
    %190 = vector.load %arg15[%c0_97, %c0_98, %c0_99] : memref<8x16x64xbf16, #tpu.memory_space<vmem>>, vector<8x16x64xbf16>
    %191 = arith.extf %190 : vector<8x16x64xbf16> to vector<8x16x64xf32>
    %192 = vector.extract_strided_slice %56 {offsets = [0, 0], sizes = [8, 16], strides = [1, 1]} : vector<16x16xf32> to vector<8x16xf32>
    %193 = vector.shape_cast %192 : vector<8x16xf32> to vector<8x16x1xf32>
    %194 = vector.broadcast %193 : vector<8x16x1xf32> to vector<8x16x64xf32>
    %195 = arith.mulf %191, %194 : vector<8x16x64xf32>
    %cst_100 = arith.constant dense<0.000000e+00> : vector<8x64xf32>
    %196 = vector.multi_reduction <add>, %195, %cst_100 [1] : vector<8x16x64xf32> to vector<8x64xf32>
    %197 = vector.extract_strided_slice %54 {offsets = [8, 0], sizes = [8, 64], strides = [1, 1]} : vector<16x64xf32> to vector<8x64xf32>
    %198 = vector.shape_cast %57 : vector<16x64xf32> to vector<1x16x64xf32>
    %199 = vector.shape_cast %197 : vector<8x64xf32> to vector<8x1x64xf32>
    %200 = vector.broadcast %198 : vector<1x16x64xf32> to vector<8x16x64xf32>
    %201 = vector.broadcast %199 : vector<8x1x64xf32> to vector<8x16x64xf32>
    %202 = arith.mulf %200, %201 : vector<8x16x64xf32>
    %203 = math.exp %202 : vector<8x16x64xf32>
    %c0_101 = arith.constant 0 : index
    %c0_102 = arith.constant 0 : index
    %c0_103 = arith.constant 0 : index
    %204 = vector.load %arg14[%c0_101, %c0_102, %c0_103] : memref<8x16x64xf32, #tpu.memory_space<vmem>>, vector<8x16x64xf32>
    tpu.vector_store %arg14[%c0_101, %c0_102, %c0_103], %203 {strides = array<i32>} : memref<8x16x64xf32, #tpu.memory_space<vmem>>, vector<8x16x64xf32>,
    %205 = vector.extract_strided_slice %55 {offsets = [8, 0], sizes = [8, 16], strides = [1, 1]} : vector<16x16xf32> to vector<8x16xf32>
    %206 = vector.shape_cast %205 : vector<8x16xf32> to vector<8x16x1xf32>
    %207 = vector.extract_strided_slice %58 {offsets = [8, 0], sizes = [8, 64], strides = [1, 1]} : vector<16x64xf32> to vector<8x64xf32>
    %208 = vector.shape_cast %207 : vector<8x64xf32> to vector<8x1x64xf32>
    %209 = vector.broadcast %206 : vector<8x16x1xf32> to vector<8x16x64xf32>
    %210 = vector.broadcast %208 : vector<8x1x64xf32> to vector<8x16x64xf32>
    %211 = arith.mulf %209, %210 : vector<8x16x64xf32>
    %212 = arith.truncf %211 : vector<8x16x64xf32> to vector<8x16x64xbf16>
    %c0_104 = arith.constant 0 : index
    %c0_105 = arith.constant 0 : index
    %c0_106 = arith.constant 0 : index
    %213 = vector.load %arg15[%c0_104, %c0_105, %c0_106] : memref<8x16x64xbf16, #tpu.memory_space<vmem>>, vector<8x16x64xbf16>
    tpu.vector_store %arg15[%c0_104, %c0_105, %c0_106], %212 {strides = array<i32>} : memref<8x16x64xbf16, #tpu.memory_space<vmem>>, vector<8x16x64xbf16>,
    %c0_107 = arith.constant 0 : index
    %c0_108 = arith.constant 0 : index
    %214 = vector.load %arg11[%c0_107, %c0_108] : memref<16x64xf32, #tpu.memory_space<vmem>>, vector<16x64xf32>
    %c0_i32_109 = arith.constant 0 : i32
    %215 = arith.index_cast %c0_i32_109 : i32 to index
    %c0_110 = arith.constant 0 : index
    %c0_111 = arith.constant 0 : index
    %216 = vector.load %arg14[%215, %c0_110, %c0_111] : memref<8x16x64xf32, #tpu.memory_space<vmem>>, vector<1x16x64xf32>
    %217 = vector.shape_cast %216 : vector<1x16x64xf32> to vector<16x64xf32>
    %218 = arith.mulf %214, %217 : vector<16x64xf32>
    %219 = arith.index_cast %c0_i32_109 : i32 to index
    %c0_112 = arith.constant 0 : index
    %c0_113 = arith.constant 0 : index
    %220 = vector.load %arg15[%219, %c0_112, %c0_113] : memref<8x16x64xbf16, #tpu.memory_space<vmem>>, vector<1x16x64xbf16>
    %221 = vector.shape_cast %220 : vector<1x16x64xbf16> to vector<16x64xbf16>
    %222 = arith.extf %221 : vector<16x64xbf16> to vector<16x64xf32>
    %223 = arith.addf %218, %222 : vector<16x64xf32>
    %224 = arith.truncf %223 : vector<16x64xf32> to vector<16x64xbf16>
    %225 = arith.index_cast %c0_i32_109 : i32 to index
    %c0_114 = arith.constant 0 : index
    %c0_115 = arith.constant 0 : index
    %226 = vector.load %arg15[%225, %c0_114, %c0_115] : memref<8x16x64xbf16, #tpu.memory_space<vmem>>, vector<1x16x64xbf16>
    %227 = vector.shape_cast %226 : vector<1x16x64xbf16> to vector<16x64xbf16>
    %228 = vector.shape_cast %224 : vector<16x64xbf16> to vector<1x16x64xbf16>
    tpu.vector_store %arg15[%225, %c0_114, %c0_115], %228 {strides = array<i32>} : memref<8x16x64xbf16, #tpu.memory_space<vmem>>, vector<1x16x64xbf16>,
    %c1_i32_116 = arith.constant 1 : i32
    %229 = arith.index_cast %c1_i32_116 : i32 to index
    %c0_117 = arith.constant 0 : index
    %c0_118 = arith.constant 0 : index
    %230 = vector.load %arg14[%229, %c0_117, %c0_118] : memref<8x16x64xf32, #tpu.memory_space<vmem>>, vector<1x16x64xf32>
    %231 = vector.shape_cast %230 : vector<1x16x64xf32> to vector<16x64xf32>
    %232 = arith.mulf %223, %231 : vector<16x64xf32>
    %233 = arith.index_cast %c1_i32_116 : i32 to index
    %c0_119 = arith.constant 0 : index
    %c0_120 = arith.constant 0 : index
    %234 = vector.load %arg15[%233, %c0_119, %c0_120] : memref<8x16x64xbf16, #tpu.memory_space<vmem>>, vector<1x16x64xbf16>
    %235 = vector.shape_cast %234 : vector<1x16x64xbf16> to vector<16x64xbf16>
    %236 = arith.extf %235 : vector<16x64xbf16> to vector<16x64xf32>
    %237 = arith.addf %232, %236 : vector<16x64xf32>
    %238 = arith.truncf %237 : vector<16x64xf32> to vector<16x64xbf16>
    %239 = arith.index_cast %c1_i32_116 : i32 to index
    %c0_121 = arith.constant 0 : index
    %c0_122 = arith.constant 0 : index
    %240 = vector.load %arg15[%239, %c0_121, %c0_122] : memref<8x16x64xbf16, #tpu.memory_space<vmem>>, vector<1x16x64xbf16>
    %241 = vector.shape_cast %240 : vector<1x16x64xbf16> to vector<16x64xbf16>
    %242 = vector.shape_cast %238 : vector<16x64xbf16> to vector<1x16x64xbf16>
    tpu.vector_store %arg15[%239, %c0_121, %c0_122], %242 {strides = array<i32>} : memref<8x16x64xbf16, #tpu.memory_space<vmem>>, vector<1x16x64xbf16>,
    %c2_i32_123 = arith.constant 2 : i32
    %243 = arith.index_cast %c2_i32_123 : i32 to index
    %c0_124 = arith.constant 0 : index
    %c0_125 = arith.constant 0 : index
    %244 = vector.load %arg14[%243, %c0_124, %c0_125] : memref<8x16x64xf32, #tpu.memory_space<vmem>>, vector<1x16x64xf32>
    %245 = vector.shape_cast %244 : vector<1x16x64xf32> to vector<16x64xf32>
    %246 = arith.mulf %237, %245 : vector<16x64xf32>
    %247 = arith.index_cast %c2_i32_123 : i32 to index
    %c0_126 = arith.constant 0 : index
    %c0_127 = arith.constant 0 : index
    %248 = vector.load %arg15[%247, %c0_126, %c0_127] : memref<8x16x64xbf16, #tpu.memory_space<vmem>>, vector<1x16x64xbf16>
    %249 = vector.shape_cast %248 : vector<1x16x64xbf16> to vector<16x64xbf16>
    %250 = arith.extf %249 : vector<16x64xbf16> to vector<16x64xf32>
    %251 = arith.addf %246, %250 : vector<16x64xf32>
    %252 = arith.truncf %251 : vector<16x64xf32> to vector<16x64xbf16>
    %253 = arith.index_cast %c2_i32_123 : i32 to index
    %c0_128 = arith.constant 0 : index
    %c0_129 = arith.constant 0 : index
    %254 = vector.load %arg15[%253, %c0_128, %c0_129] : memref<8x16x64xbf16, #tpu.memory_space<vmem>>, vector<1x16x64xbf16>
    %255 = vector.shape_cast %254 : vector<1x16x64xbf16> to vector<16x64xbf16>
    %256 = vector.shape_cast %252 : vector<16x64xbf16> to vector<1x16x64xbf16>
    tpu.vector_store %arg15[%253, %c0_128, %c0_129], %256 {strides = array<i32>} : memref<8x16x64xbf16, #tpu.memory_space<vmem>>, vector<1x16x64xbf16>,
    %c3_i32_130 = arith.constant 3 : i32
    %257 = arith.index_cast %c3_i32_130 : i32 to index
    %c0_131 = arith.constant 0 : index
    %c0_132 = arith.constant 0 : index
    %258 = vector.load %arg14[%257, %c0_131, %c0_132] : memref<8x16x64xf32, #tpu.memory_space<vmem>>, vector<1x16x64xf32>
    %259 = vector.shape_cast %258 : vector<1x16x64xf32> to vector<16x64xf32>
    %260 = arith.mulf %251, %259 : vector<16x64xf32>
    %261 = arith.index_cast %c3_i32_130 : i32 to index
    %c0_133 = arith.constant 0 : index
    %c0_134 = arith.constant 0 : index
    %262 = vector.load %arg15[%261, %c0_133, %c0_134] : memref<8x16x64xbf16, #tpu.memory_space<vmem>>, vector<1x16x64xbf16>
    %263 = vector.shape_cast %262 : vector<1x16x64xbf16> to vector<16x64xbf16>
    %264 = arith.extf %263 : vector<16x64xbf16> to vector<16x64xf32>
    %265 = arith.addf %260, %264 : vector<16x64xf32>
    %266 = arith.truncf %265 : vector<16x64xf32> to vector<16x64xbf16>
    %267 = arith.index_cast %c3_i32_130 : i32 to index
    %c0_135 = arith.constant 0 : index
    %c0_136 = arith.constant 0 : index
    %268 = vector.load %arg15[%267, %c0_135, %c0_136] : memref<8x16x64xbf16, #tpu.memory_space<vmem>>, vector<1x16x64xbf16>
    %269 = vector.shape_cast %268 : vector<1x16x64xbf16> to vector<16x64xbf16>
    %270 = vector.shape_cast %266 : vector<16x64xbf16> to vector<1x16x64xbf16>
    tpu.vector_store %arg15[%267, %c0_135, %c0_136], %270 {strides = array<i32>} : memref<8x16x64xbf16, #tpu.memory_space<vmem>>, vector<1x16x64xbf16>,
    %c4_i32_137 = arith.constant 4 : i32
    %271 = arith.index_cast %c4_i32_137 : i32 to index
    %c0_138 = arith.constant 0 : index
    %c0_139 = arith.constant 0 : index
    %272 = vector.load %arg14[%271, %c0_138, %c0_139] : memref<8x16x64xf32, #tpu.memory_space<vmem>>, vector<1x16x64xf32>
    %273 = vector.shape_cast %272 : vector<1x16x64xf32> to vector<16x64xf32>
    %274 = arith.mulf %265, %273 : vector<16x64xf32>
    %275 = arith.index_cast %c4_i32_137 : i32 to index
    %c0_140 = arith.constant 0 : index
    %c0_141 = arith.constant 0 : index
    %276 = vector.load %arg15[%275, %c0_140, %c0_141] : memref<8x16x64xbf16, #tpu.memory_space<vmem>>, vector<1x16x64xbf16>
    %277 = vector.shape_cast %276 : vector<1x16x64xbf16> to vector<16x64xbf16>
    %278 = arith.extf %277 : vector<16x64xbf16> to vector<16x64xf32>
    %279 = arith.addf %274, %278 : vector<16x64xf32>
    %280 = arith.truncf %279 : vector<16x64xf32> to vector<16x64xbf16>
    %281 = arith.index_cast %c4_i32_137 : i32 to index
    %c0_142 = arith.constant 0 : index
    %c0_143 = arith.constant 0 : index
    %282 = vector.load %arg15[%281, %c0_142, %c0_143] : memref<8x16x64xbf16, #tpu.memory_space<vmem>>, vector<1x16x64xbf16>
    %283 = vector.shape_cast %282 : vector<1x16x64xbf16> to vector<16x64xbf16>
    %284 = vector.shape_cast %280 : vector<16x64xbf16> to vector<1x16x64xbf16>
    tpu.vector_store %arg15[%281, %c0_142, %c0_143], %284 {strides = array<i32>} : memref<8x16x64xbf16, #tpu.memory_space<vmem>>, vector<1x16x64xbf16>,
    %c5_i32_144 = arith.constant 5 : i32
    %285 = arith.index_cast %c5_i32_144 : i32 to index
    %c0_145 = arith.constant 0 : index
    %c0_146 = arith.constant 0 : index
    %286 = vector.load %arg14[%285, %c0_145, %c0_146] : memref<8x16x64xf32, #tpu.memory_space<vmem>>, vector<1x16x64xf32>
    %287 = vector.shape_cast %286 : vector<1x16x64xf32> to vector<16x64xf32>
    %288 = arith.mulf %279, %287 : vector<16x64xf32>
    %289 = arith.index_cast %c5_i32_144 : i32 to index
    %c0_147 = arith.constant 0 : index
    %c0_148 = arith.constant 0 : index
    %290 = vector.load %arg15[%289, %c0_147, %c0_148] : memref<8x16x64xbf16, #tpu.memory_space<vmem>>, vector<1x16x64xbf16>
    %291 = vector.shape_cast %290 : vector<1x16x64xbf16> to vector<16x64xbf16>
    %292 = arith.extf %291 : vector<16x64xbf16> to vector<16x64xf32>
    %293 = arith.addf %288, %292 : vector<16x64xf32>
    %294 = arith.truncf %293 : vector<16x64xf32> to vector<16x64xbf16>
    %295 = arith.index_cast %c5_i32_144 : i32 to index
    %c0_149 = arith.constant 0 : index
    %c0_150 = arith.constant 0 : index
    %296 = vector.load %arg15[%295, %c0_149, %c0_150] : memref<8x16x64xbf16, #tpu.memory_space<vmem>>, vector<1x16x64xbf16>
    %297 = vector.shape_cast %296 : vector<1x16x64xbf16> to vector<16x64xbf16>
    %298 = vector.shape_cast %294 : vector<16x64xbf16> to vector<1x16x64xbf16>
    tpu.vector_store %arg15[%295, %c0_149, %c0_150], %298 {strides = array<i32>} : memref<8x16x64xbf16, #tpu.memory_space<vmem>>, vector<1x16x64xbf16>,
    %c6_i32_151 = arith.constant 6 : i32
    %299 = arith.index_cast %c6_i32_151 : i32 to index
    %c0_152 = arith.constant 0 : index
    %c0_153 = arith.constant 0 : index
    %300 = vector.load %arg14[%299, %c0_152, %c0_153] : memref<8x16x64xf32, #tpu.memory_space<vmem>>, vector<1x16x64xf32>
    %301 = vector.shape_cast %300 : vector<1x16x64xf32> to vector<16x64xf32>
    %302 = arith.mulf %293, %301 : vector<16x64xf32>
    %303 = arith.index_cast %c6_i32_151 : i32 to index
    %c0_154 = arith.constant 0 : index
    %c0_155 = arith.constant 0 : index
    %304 = vector.load %arg15[%303, %c0_154, %c0_155] : memref<8x16x64xbf16, #tpu.memory_space<vmem>>, vector<1x16x64xbf16>
    %305 = vector.shape_cast %304 : vector<1x16x64xbf16> to vector<16x64xbf16>
    %306 = arith.extf %305 : vector<16x64xbf16> to vector<16x64xf32>
    %307 = arith.addf %302, %306 : vector<16x64xf32>
    %308 = arith.truncf %307 : vector<16x64xf32> to vector<16x64xbf16>
    %309 = arith.index_cast %c6_i32_151 : i32 to index
    %c0_156 = arith.constant 0 : index
    %c0_157 = arith.constant 0 : index
    %310 = vector.load %arg15[%309, %c0_156, %c0_157] : memref<8x16x64xbf16, #tpu.memory_space<vmem>>, vector<1x16x64xbf16>
    %311 = vector.shape_cast %310 : vector<1x16x64xbf16> to vector<16x64xbf16>
    %312 = vector.shape_cast %308 : vector<16x64xbf16> to vector<1x16x64xbf16>
    tpu.vector_store %arg15[%309, %c0_156, %c0_157], %312 {strides = array<i32>} : memref<8x16x64xbf16, #tpu.memory_space<vmem>>, vector<1x16x64xbf16>,
    %c7_i32_158 = arith.constant 7 : i32
    %313 = arith.index_cast %c7_i32_158 : i32 to index
    %c0_159 = arith.constant 0 : index
    %c0_160 = arith.constant 0 : index
    %314 = vector.load %arg14[%313, %c0_159, %c0_160] : memref<8x16x64xf32, #tpu.memory_space<vmem>>, vector<1x16x64xf32>
    %315 = vector.shape_cast %314 : vector<1x16x64xf32> to vector<16x64xf32>
    %316 = arith.mulf %307, %315 : vector<16x64xf32>
    %317 = arith.index_cast %c7_i32_158 : i32 to index
    %c0_161 = arith.constant 0 : index
    %c0_162 = arith.constant 0 : index
    %318 = vector.load %arg15[%317, %c0_161, %c0_162] : memref<8x16x64xbf16, #tpu.memory_space<vmem>>, vector<1x16x64xbf16>
    %319 = vector.shape_cast %318 : vector<1x16x64xbf16> to vector<16x64xbf16>
    %320 = arith.extf %319 : vector<16x64xbf16> to vector<16x64xf32>
    %321 = arith.addf %316, %320 : vector<16x64xf32>
    %322 = arith.truncf %321 : vector<16x64xf32> to vector<16x64xbf16>
    %323 = arith.index_cast %c7_i32_158 : i32 to index
    %c0_163 = arith.constant 0 : index
    %c0_164 = arith.constant 0 : index
    %324 = vector.load %arg15[%323, %c0_163, %c0_164] : memref<8x16x64xbf16, #tpu.memory_space<vmem>>, vector<1x16x64xbf16>
    %325 = vector.shape_cast %324 : vector<1x16x64xbf16> to vector<16x64xbf16>
    %326 = vector.shape_cast %322 : vector<16x64xbf16> to vector<1x16x64xbf16>
    tpu.vector_store %arg15[%323, %c0_163, %c0_164], %326 {strides = array<i32>} : memref<8x16x64xbf16, #tpu.memory_space<vmem>>, vector<1x16x64xbf16>,
    %c8_i32_165 = arith.constant 8 : i32
    %c0_166 = arith.constant 0 : index
    %c0_167 = arith.constant 0 : index
    %327 = vector.load %arg11[%c0_166, %c0_167] : memref<16x64xf32, #tpu.memory_space<vmem>>, vector<16x64xf32>
    tpu.vector_store %arg11[%c0_166, %c0_167], %321 {strides = array<i32>} : memref<16x64xf32, #tpu.memory_space<vmem>>, vector<16x64xf32>,
    %c0_168 = arith.constant 0 : index
    %c0_169 = arith.constant 0 : index
    %c0_170 = arith.constant 0 : index
    %328 = vector.load %arg15[%c0_168, %c0_169, %c0_170] : memref<8x16x64xbf16, #tpu.memory_space<vmem>>, vector<8x16x64xbf16>
    %329 = arith.extf %328 : vector<8x16x64xbf16> to vector<8x16x64xf32>
    %330 = vector.extract_strided_slice %56 {offsets = [8, 0], sizes = [8, 16], strides = [1, 1]} : vector<16x16xf32> to vector<8x16xf32>
    %331 = vector.shape_cast %330 : vector<8x16xf32> to vector<8x16x1xf32>
    %332 = vector.broadcast %331 : vector<8x16x1xf32> to vector<8x16x64xf32>
    %333 = arith.mulf %329, %332 : vector<8x16x64xf32>
    %cst_171 = arith.constant dense<0.000000e+00> : vector<8x64xf32>
    %334 = vector.multi_reduction <add>, %333, %cst_171 [1] : vector<8x16x64xf32> to vector<8x64xf32>
    %335 = tpu.concatenate %196, %334 in 0 : vector<8x64xf32>, vector<8x64xf32> -> vector<16x64xf32>
    %c0_172 = arith.constant 0 : index
    %c0_173 = arith.constant 0 : index
    %336 = vector.load %arg8[%c0_172, %c0_173] : memref<1x64xf32, #tpu.memory_space<vmem>>, vector<1x64xf32>
    %337 = vector.broadcast %336 : vector<1x64xf32> to vector<16x64xf32>
    %338 = arith.mulf %40, %337 : vector<16x64xf32>
    %339 = arith.addf %335, %338 : vector<16x64xf32>
    %cst_174 = arith.constant 0.000000e+00 : f32
    %340 = vector.broadcast %cst_174 : f32 to vector<16x64xf32>
    %341 = arith.subf %340, %8 : vector<16x64xf32>
    %342 = math.exp %341 : vector<16x64xf32>
    %cst_175 = arith.constant 1.000000e+00 : f32
    %343 = vector.broadcast %cst_175 : f32 to vector<16x64xf32>
    %344 = arith.addf %343, %342 : vector<16x64xf32>
    %cst_176 = arith.constant 1.000000e+00 : f32
    %345 = vector.broadcast %cst_176 : f32 to vector<16x64xf32>
    %346 = arith.divf %345, %344 : vector<16x64xf32>
    %347 = arith.mulf %8, %346 : vector<16x64xf32>
    %348 = arith.mulf %339, %347 : vector<16x64xf32>
    %349 = arith.truncf %348 : vector<16x64xf32> to vector<16x64xbf16>
    %c0_177 = arith.constant 0 : index
    %c0_178 = arith.constant 0 : index
    %350 = vector.load %arg9[%c0_177, %c0_178] : memref<64x32xbf16, #tpu.memory_space<vmem>>, vector<64x32xbf16>
    %cst_179 = arith.constant dense<0.000000e+00> : vector<16x32xf32>
    %351 = tpu.matmul %349, %350, %cst_179 {dimension_numbers = #tpu.dot_dimension_numbers<[1], [0], [0], [1], [0, 0, 1, 1], [], []>} : vector<16x64xbf16>, vector<64x32xbf16>, vector<16x32xf32> -> vector<16x32xf32>
    %c0_180 = arith.constant 0 : index
    %c0_181 = arith.constant 0 : index
    %c0_182 = arith.constant 0 : index
    %352 = vector.load %arg10[%c0_180, %c0_181, %c0_182] : memref<1x16x32xf32, #tpu.memory_space<vmem>>, vector<1x16x32xf32>
    %353 = vector.shape_cast %352 : vector<1x16x32xf32> to vector<16x32xf32>
    %354 = vector.shape_cast %351 : vector<16x32xf32> to vector<1x16x32xf32>
    tpu.vector_store %arg10[%c0_180, %c0_181, %c0_182], %354 {strides = array<i32>} : memref<1x16x32xf32, #tpu.memory_space<vmem>>, vector<1x16x32xf32>,
    return
  }
  func.func @transform_0(%arg0: i32, %arg1: i32) -> (i32, i32, i32) {
    %c0_i32 = arith.constant 0 : i32
    %c0_i32_0 = arith.constant 0 : i32
    return %arg0, %arg1, %c0_i32 : i32, i32, i32
  }
  func.func @transform_1(%arg0: i32, %arg1: i32) -> (i32, i32) {
    %c0_i32 = arith.constant 0 : i32
    %c0_i32_0 = arith.constant 0 : i32
    %c0_i32_1 = arith.constant 0 : i32
    return %c0_i32, %c0_i32_0 : i32, i32
  }
  func.func @transform_2(%arg0: i32, %arg1: i32) -> (i32, i32) {
    %c0_i32 = arith.constant 0 : i32
    %c0_i32_0 = arith.constant 0 : i32
    %c0_i32_1 = arith.constant 0 : i32
    return %c0_i32, %c0_i32_0 : i32, i32
  }
  func.func @transform_3(%arg0: i32, %arg1: i32) -> (i32, i32) {
    %c0_i32 = arith.constant 0 : i32
    %c0_i32_0 = arith.constant 0 : i32
    %c0_i32_1 = arith.constant 0 : i32
    return %c0_i32, %c0_i32_0 : i32, i32
  }
  func.func @transform_4(%arg0: i32, %arg1: i32) -> (i32, i32) {
    %c0_i32 = arith.constant 0 : i32
    %c0_i32_0 = arith.constant 0 : i32
    %c0_i32_1 = arith.constant 0 : i32
    return %c0_i32, %c0_i32_0 : i32, i32
  }
  func.func @transform_5(%arg0: i32, %arg1: i32) -> (i32, i32) {
    %c0_i32 = arith.constant 0 : i32
    %c0_i32_0 = arith.constant 0 : i32
    %c0_i32_1 = arith.constant 0 : i32
    return %c0_i32, %c0_i32_0 : i32, i32
  }
  func.func @transform_6(%arg0: i32, %arg1: i32) -> (i32, i32) {
    %c0_i32 = arith.constant 0 : i32
    %c0_i32_0 = arith.constant 0 : i32
    %c0_i32_1 = arith.constant 0 : i32
    return %c0_i32, %c0_i32_0 : i32, i32
  }
  func.func @transform_7(%arg0: i32, %arg1: i32) -> (i32, i32) {
    %c0_i32 = arith.constant 0 : i32
    %c0_i32_0 = arith.constant 0 : i32
    %c0_i32_1 = arith.constant 0 : i32
    return %c0_i32, %c0_i32_0 : i32, i32
  }
  func.func @transform_8(%arg0: i32, %arg1: i32) -> (i32, i32, i32) {
    %c0_i32 = arith.constant 0 : i32
    %c0_i32_0 = arith.constant 0 : i32
    return %arg0, %arg1, %c0_i32 : i32, i32, i32
  }
}

</mosaic_0001>

<bundles_post_ra>
// kernel: tpu_custom_call.1
= control target key start
LH: loop header
LB: loop body
LE: loop exit
PB: predicated region body
PF: predicated region fallthrough
CT: control target
= control target key end

     0   :  { %13 = vsyncpa [#allocation8], 0  ;;  %s3463_s0 = inlined_call_operand.vmem [shape: bf16[2,32,32], index: 0, kind: input, shape index: {}]   ;;  %s3464_s1 = inlined_call_operand.vmem [shape: bf16[32,128], index: 1, kind: input, shape index: {}]   ;;  %s3465_s2 = inlined_call_operand.vmem [shape: f32[4,64], index: 2, kind: input, shape index: {}]   ;;  %s3466_s3 = inlined_call_operand.hbm [shape: bf16[64,96], index: 3, kind: input, shape index: {}]   ;;  %s3467_s4 = inlined_call_operand.vmem [shape: f32[1,64], index: 4, kind: input, shape index: {}]   ;;  %s3468_s5 = inlined_call_operand.hbm [shape: f32[16,64], index: 5, kind: input, shape index: {}]   ;;  %s3469_s6 = inlined_call_operand.vmem [shape: f32[1,64], index: 6, kind: input, shape index: {}]   ;;  %s3470_s7 = inlined_call_operand.vmem [shape: bf16[64,32], index: 7, kind: input, shape index: {}]   ;;  %s3471_s8 = inlined_call_operand.hbm [shape: f32[2,32,32], index: 8, kind: output, shape index: {}]  }
   0x1   :  { %14 = vsyncpa [#allocation11], 0 }
   0x2   :  { %15 = vsyncpa [#allocation9], 0 }
   0x3   :  { %17 = vsyncpa [#allocation9 + $0x1], 0  ;;  %s2698_s27 = smov 0   ;;  %s2700_s28 = smov 0  }
   0x4   :  { %s2702_s29 = smov 0   ;;  %s2704_s30 = smov 0  }
   0x5   :  { %s2706_s9 = smov 0   ;;  %s2708_s10 = smov 0  }
   0x6   :  { %s2710_s11 = smov 0   ;;  %s2712_s12 = smov 0  }
   0x7 LB: > { %3483 = sst [smem:[#allocation16_spill]] %s2609_s27  ;;  %s2192_s13 = sadd.s32 4294967295, %s2637_s12   ;;  %s2637_s12 = sphi %s2712_s12, %s23_s12   ;;  %s2633_s11 = sphi %s2710_s11, %s3507_s11   ;;  %s2629_s10 = sphi %s2708_s10, %s3506_s10   ;;  %s2625_s9 = sphi %s2706_s9, %s3505_s9   ;;  %s2621_s30 = sphi %s2704_s30, %s3504_s30   ;;  %s2617_s29 = sphi %s2702_s29, %s3503_s29   ;;  %s2613_s28 = sphi %s2700_s28, %s3509_s28   ;;  %s2609_s27 = sphi %s2698_s27, %s3508_s27  }
   0x8   : > { %3484 = sst [smem:[#allocation17_spill]] %s2617_s29  ;;  %s2193_s14 = sadd.s32 4294967294, %s2637_s12  }
   0x9   : > { %3485 = sst [smem:[#allocation18_spill]] %s2629_s10  ;;  %s32_s15 = sadd.s32 1, %s2629_s10 }
   0xa   : > { %3486 = sst [smem:[#allocation19_spill]] %s2633_s11  ;;  %s35_s16 = sadd.s32 1, %s2633_s11 }
   0xb   : > { %p33_p0 = scmp.ge.s32.totalorder %s32_s15, 2  ;;  %s219_s17 = sadd.s32 1, %s2617_s29 }
   0xc   : > { %p229_p1 = scmp.ne.s32.totalorder %s2617_s29, %s2613_s28  ;;  %p230_p2 = scmp.eq.s32.totalorder %s2192_s13, 3 }
   0xd   : > { %s3511_s15 = smov (%p33_p0, %s32_s15), 0  ;;  %s3513_s16 = smov (!%p33_p0, %s35_s16), %s2633_s11 }
   0xe   : > { %3487 = sst [smem:[#allocation20_spill]] %s3511_s15  ;;  %s215_s18 = ssub.s32 %s2629_s10, %s3511_s15 }
   0xf   : > { %p2750_p3 = por %p230_p2, %p229_p1  ;;  %p37_p4 = scmp.ge.s32.totalorder %s3513_s16, 2 }
  0x10   : > { %p235_p5 = scmp.ne.s32.totalorder %s2613_s28, %s2609_s27  ;;  %p236_p6 = scmp.eq.s32.totalorder %s2193_s14, 3 }
  0x11   : > { %s3488_s19 = scalar_select %p2750_p3, 1, 0 }
  0x12   : > { %p2194_p7 = scmp.ge.s32.totalorder %s2637_s12, 1  ;;  %s3515_s16 = smov (%p37_p4, %s3513_s16), 0 }
  0x13   : > { %3489 = sst [smem:[#allocation21_spill]] %s3515_s16  ;;  %p2759_p8 = por %p236_p6, %p235_p5 }
  0x14   : > { %p243_p9 = scmp.lt.s32.totalorder %s2637_s12, 5  ;;  %s214_s21 = ssub.s32 %s2633_s11, %s3515_s16 }
  0x15   : > { %s3490_s20 = scalar_select %p2759_p8, 1, 0 }
  0x16   : > { %s216_s22 = sor.u32 %s215_s18, %s214_s21  ;;  %p2766_p10 = pnand %p2194_p7, %p243_p9 }
  0x17   : > { %3491 = sst [smem:[#allocation22_spill]] %s3490_s20  ;;  %p217_p11 = scmp.eq.s32.totalorder %s216_s22, 0 }
  0x18   : > { %s3492_s23 = scalar_select %p2766_p10, 1, 0 }
  0x19   : > { %p2770_p12 = scmp.eq.s32.totalorder %s2192_s13, 0  ;;  %p2287_p13 = pneg %p2766_p10 }
  0x1a   : > { %s2777_s25 = scalar_select %p217_p11, %s2617_s29, %s219_s17  }
  0x1b   : > { %s3493_s24 = scalar_select %p2770_p12, 1, 0 }
  0x1c   : > { %3494 = sst [smem:[#allocation23_spill]] %s2777_s25  ;;  %s2639_s26 = smov [#allocation7]  }
  0x1d   : > { %s261_s14 = sshll.u32 %s2639_s26, 4  ;;  %p2781_p0 = pnand %p2770_p12, %p2287_p13  ;;  %s262_s14 = int_to_ptr.vmem [resolvable:$true] %s261_s14 }
  0x1e   : > { %s2479_s22 = scalar_lea.hbm %s3466_s3, 512 }
  0x1f   : > { %p2480_p1 = scmp.ne.s32.totalorder %s3466_s3, %s2479_s22  ;;  %p2481_p2 = pneg %p2781_p0 }
  0x20   : > { %p2486_p6 = scmp.lt.u32.totalorder %s2479_s22, %s3466_s3 }
  0x21   : > { %p2482_p4 = pnand %p2481_p2, %p2480_p1 }
  0x23   : > { %p2483_p5 = pneg %p2482_p4 }
  0x25   : > { %p2488_p7 = pnand %p2486_p6, %p2483_p5 }
  0x27   : > { %2491 = shalt.err (!%p2488_p7)
}
  0x28   : > { %s2492_s11 = scalar_lea.vmem %s262_s14, 512  ;;  %p2500_p8 = scmp.lt.s32.totalorder %s262_s14, %s262_s14 }
  0x29   : > { %p2493_p9 = scmp.ne.s32.totalorder %s262_s14, %s2492_s11  ;;  %p2501_p3 = scmp.lt.s32.totalorder %s2492_s11, %s2492_s11 }
  0x2b   : > { %p2495_p11 = pnand %p2493_p9, %p2481_p2  ;;  %p2502_p12 = por %p2501_p3, %p2500_p8 }
  0x2d   : > { %p2496_p13 = pneg %p2495_p11 }
  0x2f   : > { %p2503_p10 = pnand %p2502_p12, %p2496_p13 }
  0x31   : > { %2506 = shalt.err (!%p2503_p10)
}
  0x32   : > { %s2640_s15 = smov 64   ;;  %s2641_s16 = smov 4  }
  0x33   : > { %2290 = dma.hbm_to_vmem [thread:$0]  (!%p2781_p0), %s3466_s3, 512, %s262_s14, [#allocation8], %s2640_s15, %s2640_s15, %s2641_s16  }
  0x34   : > { %s2642_s22 = smov [#allocation10]   ;;  %s2507_s25 = scalar_lea.hbm %s3468_s5, 256 }
  0x35   : > { %s277_s17 = sshll.u32 %s2642_s22, 4  ;;  %p2508_p3 = scmp.ne.s32.totalorder %s3468_s5, %s2507_s25  ;;  %s278_s17 = int_to_ptr.vmem [resolvable:$true] %s277_s17 }
  0x36   : > { %p2514_p12 = scmp.lt.u32.totalorder %s2507_s25, %s3468_s5 }
  0x37   : > { %p2510_p8 = pnand %p2508_p3, %p2481_p2 }
  0x39   : > { %p2511_p10 = pneg %p2510_p8 }
  0x3b   : > { %p2516_p1 = pnand %p2514_p12, %p2511_p10 }
  0x3d   : > { %2519 = shalt.err (!%p2516_p1)
}
  0x3e   : > { %s2520_s14 = scalar_lea.vmem %s278_s17, 256  ;;  %p2528_p7 = scmp.lt.s32.totalorder %s278_s17, %s278_s17 }
  0x3f   : > { %p2521_p4 = scmp.ne.s32.totalorder %s278_s17, %s2520_s14  ;;  %p2529_p9 = scmp.lt.s32.totalorder %s2520_s14, %s2520_s14 }
  0x41   : > { %p2523_p5 = pnand %p2521_p4, %p2481_p2  ;;  %p2530_p11 = por %p2529_p9, %p2528_p7 }
  0x43   : > { %p2524_p6 = pneg %p2523_p5 }
  0x45   : > { %p2531_p13 = pnand %p2530_p11, %p2524_p6 }
  0x47   : > { %2534 = shalt.err (!%p2531_p13)
}
  0x48   : > { %s2643_s29 = smov 128   ;;  %s2644_s10 = smov 8  }
  0x49   : > { %2293 = dma.hbm_to_vmem [thread:$0]  (!%p2781_p0), %s3468_s5, 256, %s278_s17, [#allocation11], %s2643_s29, %s2643_s29, %s2644_s10  }
  0x4a   : > { %p3496_p3 = scmp.ne.s32.totalorder %s3492_s23, 0 }
  0x4b   : > { %p3497_p8 = scmp.ne.s32.totalorder (!%p3496_p3), %s3493_s24, 0 }
  0x4c   : > { %312 = sbr.rel (%p3496_p3) target bundleno = 1080 (0x438), region = 52 }
  0x53   : > { %2596 = dma.done.wait (%p3497_p8), [#allocation8], 512  }
  0x54   : > { %2598 = vsyncadd (%p3497_p8), [#allocation8], 4294966784 }
  0x55   : > { %2600 = dma.done.wait (%p3497_p8), [#allocation11], 256  }
  0x56   : > { %2602 = vsyncadd (%p3497_p8), [#allocation11], 4294967040  ;;  %s351_s25 = sand.u32 1, %s2613_s28   ;;  %s2839_s23 = sshll.u32 %s2621_s30, 1 }
  0x57   : > { %s2201_s18 = sshll.u32 %s351_s25, 4  ;;  %p355_p0 = scmp.lt.s32.totalorder %s2625_s9, 1 }
  0x58   : > { %p357_p2 = scmp.lt.s32.totalorder %s2839_s23, 3  ;;  %s2850_s11 = scalar_lea.vmem [#allocation12], %s2201_s18 }
  0x59   : > { %s356_s15 = scalar_select %p355_p0, %s2625_s9, 1 }
  0x5a   : > { %s358_s16 = scalar_select %p357_p2, %s2839_s23, 3 }
  0x5b   : > { %s2203_s21 = sshll.u32 %s356_s15, 2  ;;  %p2205_p10 = scmp.ne.s32.totalorder %s2621_s30, 0 }
  0x5c   : > { %s360_s13 = sadd.s32 %s2203_s21, %s358_s16  ;;  %vm370_vm0 = vcmask (!%p2205_p10), 523264   ;;  %vm373_vm1 = vcmask (!%p2205_p10), 518144   ;;  %v2645_v0 = vmov (!%p2205_p10), 0.0  }
  0x5d   : > { %s2204_s24 = sshll.u32 %s360_s13, 2  ;;  %369 = sbr.rel (%p2205_p10) target bundleno = 100 (0x64), region = 64  ;;  %371 = vst.msk [vmem:[#allocation2] sm:$0xff] (!%p2205_p10), %vm370_vm0, %v2645_v0  ;;  %372 = vst.msk [vmem:[#allocation2 + $0x8] sm:$0xff] (!%p2205_p10), %vm370_vm0, %v2645_v0 }
  0x5e   : > { %s362_s26 = scalar_lea.vmem %s3463_s0, %s2204_s24  ;;  %374 = vst.msk [vmem:[#allocation3] sm:$0x7] (!%p2205_p10), %vm373_vm1, %v2645_v0 }
  0x64 PF: > { %v2380_v1 = vld [vmem:[%s3464_s1] sm:$0xff]   ;;  %v2646_v2 = vmov 0.0   ;;  %v2381_v3 = vld [vmem:[%s3464_s1 + $0x8] sm:$0xff]   ;;  %vm2647_vm2 = vmmov 0   ;;  %vm398_vm3 = vcmask 261120   ;;  %vm444_vm4 = vcmask 518144  }
  0x65   : > { %2245 = vmatprep.subr.bf16.mxu0 %v2646_v2  ;;  %2253 = vmatprep.subr.bf16.mxu1 %v2646_v2  ;;  %v2382_v4 = vld [vmem:[%s362_s26] sm:$0xff]   ;;  %v443_v5 = vld [vmem:[#allocation3] sm:$0x7]  ;;  %v2384_v7 = vld [vmem:[#allocation7 + $0x8] sm:$0xff]   ;;  %vm446_vm5 = vcmask 523264   ;;  %vm449_vm6 = vcmask 523269   ;;  %v630_v53 = vlaneseq }
  0x66   : > { %2246 = vmatpush3.bf16.msra.mxu0 %v2380_v1  ;;  %2249 = vmatprep.mubr.msk.bf16.mxu0 %vm2647_vm2, %v2646_v2  ;;  %445 = vst.msk [vmem:[#allocation4] sm:$0x7] %vm444_vm4, %v443_v5  ;;  %v2383_v6 = vld [vmem:[#allocation7] sm:$0xff]   ;;  %v2385_v8 = vld [vmem:[#allocation7 + $0x10] sm:$0xff]   ;;  %v2386_v9 = vld [vmem:[#allocation7 + $0x18] sm:$0xff]   ;;  %s2649_s26 = smov 64  }
  0x67   : > { %2247 = vmatprep.subr.bf16.mxu0 %v2646_v2  ;;  %2261 = vmatprep.mubr.msk.bf16.mxu1 %vm2647_vm2, %v2646_v2  ;;  %v2210_v14 = vld [vmem:[%s3465_s2] ss:$0 sm:$0xff]  ;;  %v2211_v15 = vld [vmem:[%s3465_s2 + $0x1] ss:$0 sm:$0xff]  ;;  %v2212_v16 = vld [vmem:[%s3465_s2 + $0x2] ss:$0 sm:$0xff] }
  0x68   : > { %2254 = vmatpush3.bf16.msra.mxu1 %v2383_v6  ;;  %v2213_v23 = vld [vmem:[%s3465_s2 + $0x3] ss:$0 sm:$0xff]  ;;  %v2898_v54 = vshrl.u32 %v630_v53, 7  ;;  %v2219_v57 = vld [vmem:[%s3467_s4] ss:$0 sm:$0xff]  ;;  %vm1927_vm11 = vcmask 1041409  }
  0x69   : > { %2255 = vmatprep.subr.bf16.mxu1 %v2646_v2  ;;  %vm1929_vm12 = vcmask 1042434   ;;  %vm1931_vm13 = vcmask 1043459   ;;  %vm1933_vm14 = vcmask 1044484   ;;  %vm1935_vm15 = vcmask 1045509   ;;  %s2228_s13 = sshll.u32 %s2625_s9, 2  ;;  %s2088_s17 = sshll.u32 %s2850_s11, 4  ;;  %s3403_s17 = int_to_ptr.vmem [resolvable:$true] %s2088_s17 }
  0x6a   : > { %2248 = vmatpush3.bf16.msra.mxu0 %v2381_v3  ;;  %v2901_v55 = vsub.s32 0, %v2898_v54  ;;  %v793_v56 = vsub.s32 1, %v2898_v54  ;;  %v805_v0 = vsub.s32 2, %v2898_v54  ;;  %v817_v1 = vsub.s32 3, %v2898_v54  ;;  %s2085_s24 = sadd.s32 %s2228_s13, %s2839_s23  ;;  %s3411_s9 = scalar_lea.sflag [#allocation9], %s351_s25 }
  0x6b   : > { %2265 = vmatprep.subr.bf16.mxu0 %v2646_v2  ;;  %v829_v3 = vsub.s32 4, %v2898_v54  ;;  %vm1937_vm0 = vcmask 1046534   ;;  %vm1939_vm1 = vcmask 1047559   ;;  %s2229_s22 = sshll.u32 %s2085_s24, 7  ;;  %s2535_s23 = scalar_lea.vmem %s3403_s17, 256 }
  0x6c   : > { %2256 = vmatpush3.bf16.msra.mxu1 %v2384_v7  ;;  %v841_v7 = vsub.s32 5, %v2898_v54  ;;  %s3401_s29 = scalar_lea.hbm %s3471_s8, %s2229_s22  ;;  %p2536_p12 = scmp.ne.s32.totalorder %s3403_s17, %s2535_s23 }
  0x6d   : > { %2250 = vmatmul.mubr.msk.bf16.vlgmr.msra.gmra.mrb[0].mxu0 %vm398_vm3, %v2382_v4  ;;  %2257 = vmatprep.subr.bf16.mxu1 %v2646_v2  ;;  %p3498_p1 = scmp.ne.s32.totalorder %s3488_s19, 0  ;;  %s2650_s10 = smov [#allocation12]  }
  0x6e   : > { %2273 = vmatprep.mubr.msk.bf16.mxu0 %vm2647_vm2, %v2646_v2  ;;  %s2539_s30 = sshll.u32 %s2650_s10, 4  ;;  %s2540_s30 = int_to_ptr.vmem [resolvable:$false] %s2539_s30 }
  0x6f   : > { %p2537_p4 = pnand %p2536_p12, %p3498_p1  ;;  %s2541_s27 = scalar_lea.vmem %s2540_s30, 512 }
  0x70   : > { %2258 = vmatpush3.bf16.msra.mxu1 %v2385_v8  ;;  %v853_v8 = vsub.s32 6, %v2898_v54  ;;  %p2542_p6 = scmp.lt.s32.totalorder %s3403_s17, %s2540_s30  ;;  %p2543_p7 = scmp.lt.s32.totalorder %s2541_s27, %s2535_s23 }
  0x71   : > { %2259 = vmatprep.subr.bf16.mxu1 %v2646_v2  ;;  %p2538_p5 = pneg %p2537_p4 }
  0x72   : > { %p2544_p9 = por %p2543_p7, %p2542_p6 }
  0x74   : > { %2260 = vmatpush3.bf16.msra.mxu1 %v2386_v9  ;;  %v865_v9 = vsub.s32 7, %v2898_v54  ;;  %p2545_p11 = pnand %p2544_p9, %p2538_p5 }
 0x140   : > { %v2870_v10 = vpop.f32.mrb[0].mxu0 }
 0x141   : > { %447 = vst.msk [vmem:[#allocation4 + $0x3] sm:$0xff] %vm446_vm5, %v2870_v10  ;;  %v2251_v11 = vpop.f32.mrb[1].mxu0 }
 0x142   : > { %v2874_v12 = vpop.f32.mrb[2].mxu0 }
 0x143   : > { %448 = vst.msk [vmem:[#allocation4 + $0xb] sm:$0xff] %vm446_vm5, %v2874_v12  ;;  %v2252_v13 = vpop.f32.mrb[3].mxu0 }
 0x144   : > { %450 = vst.msk [vmem:[#allocation3 - $0x5] sm:$0xe0] %vm449_vm6, %v2874_v12 }
 0x148   : > { %v451_v17 = vld [vmem:[#allocation4] sm:$0xff] }
 0x149   : > { %v460_v18 = vld [vmem:[#allocation4 + $0x1] sm:$0xff]  ;;  %v458_v20 = vmul.f32 %v2210_v14, %v451_v17 }
 0x14a   : > { %v471_v19 = vld [vmem:[#allocation4 + $0x2] sm:$0xff]  ;;  %v467_v21 = vmul.f32 %v2211_v15, %v460_v18  ;;  %v472_v26 = vld [vmem:[#allocation4 + $0xa] sm:$0xff] }
 0x14b   : > { %v482_v22 = vld [vmem:[#allocation4 + $0x3] sm:$0xff]  ;;  %v478_v30 = vmul.f32 %v2212_v16, %v471_v19  ;;  %v483_v31 = vld [vmem:[#allocation4 + $0xb] sm:$0xff]  ;;  %v479_v33 = vmul.f32 %v2212_v16, %v472_v26 }
 0x14c   : > { %v452_v24 = vld [vmem:[#allocation4 + $0x8] sm:$0xff]  ;;  %v469_v29 = vadd.f32 %v467_v21, %v458_v20  ;;  %v489_v35 = vmul.f32 %v2213_v23, %v482_v22  ;;  %v490_v37 = vmul.f32 %v2213_v23, %v483_v31  ;;  %v2648_v31 = vmov 1966171168  }
 0x14d   : > { %v461_v25 = vld [vmem:[#allocation4 + $0x9] sm:$0xff]  ;;  %v459_v27 = vmul.f32 %v2210_v14, %v452_v24 }
 0x14e   : > { %v468_v28 = vmul.f32 %v2211_v15, %v461_v25  ;;  %v480_v34 = vadd.f32 %v478_v30, %v469_v29 }
 0x150   : > { %v470_v32 = vadd.f32 %v468_v28, %v459_v27  ;;  %v491_v38 = vadd.f32 %v489_v35, %v480_v34 }
 0x152   : > { %v481_v36 = vadd.f32 %v479_v33, %v470_v32  ;;  %v493_v40 = vsub.f32 0.0, %v491_v38  ;;  %v628_v32 = vunpack.c.l.s4 %v2648_v31 }
 0x154   : > { %v492_v39 = vadd.f32 %v490_v37, %v481_v36  ;;  %v495_v42 = vmul.f32 1.442695, %v493_v40  ;;  %v629_v36 = vunpack.c.0.s8 %v628_v32 }
 0x156   : > { %v494_v41 = vsub.f32 0.0, %v492_v39  ;;  %2391 = vpow2.f32 %v495_v42 }
 0x158   : > { %v497_v43 = vmul.f32 1.442695, %v494_v41 }
 0x15a   : > { %2393 = vpow2.f32 %v497_v43  ;;  %v2975_v43 = vsub.s32 %v629_v36, %v2898_v54 }
 0x160   : > { %v2392_v44 = vpop.eup %2391 }
 0x161   : > { %v499_v45 = vadd.f32 1.0, %v2392_v44 }
 0x163   : > { %2395 = vrcp.f32 %v499_v45 }
 0x164   : > { %v2394_v46 = vpop.eup %2393 }
 0x165   : > { %v500_v47 = vadd.f32 1.0, %v2394_v46 }
 0x167   : > { %2397 = vrcp.f32 %v500_v47 }
 0x16d   : > { %v2396_v48 = vpop.eup %2395 }
 0x16e   : > { %v2891_v50 = vmul.f32 %v2396_v48, %v491_v38 }
 0x171   : > { %v2398_v49 = vpop.eup %2397 }
 0x172   : > { %v2893_v51 = vmul.f32 %v2398_v49, %v492_v39 }
 0x174   : > { %v507_v52 = vpack.c.bf16 %v2893_v51, %v2891_v50 }
 0x176   : > { %2262 = vmatmul.mubr.msk.bf16.vlgmr.msra.gmra.mrb[0].mxu1 %vm446_vm5, %v507_v52 }
 0x249   : > { %v577_v58 = vpop.f32.mrb[0].mxu1 }
 0x24a   : > { %v2907_v59 = vadd.f32 %v2219_v57, %v577_v58  ;;  %v2263_v60 = vpop.f32.mrb[1].mxu1  ;;  %v2909_v61 = vrot.slane %v577_v58, %v793_v56  ;;  %v2912_v62 = vrot.slane %v577_v58, %v2901_v55  ;;  %v2952_v22 = vrot.slane %v577_v58, %v805_v0 }
 0x24b   : > { %v2914_v63 = vpop.f32.mrb[2].mxu1  ;;  %v2956_v23 = vrot.slane %v577_v58, %v817_v1  ;;  %v2960_v25 = vrot.slane %v577_v58, %v829_v3  ;;  %v2964_v29 = vrot.slane %v577_v58, %v841_v7  ;;  %v2968_v33 = vrot.slane %v577_v58, %v853_v8 }
 0x24c   : > { %v593_v4 = vmin.f32 %v2907_v59, 20.0  ;;  %v2921_v5 = vadd.f32 %v2219_v57, %v2914_v63  ;;  %797 = vbcast.lane.b32.xlu1 %v2909_v61, 320  ;;  %785 = vbcast.lane.b32.xlu0 %v2912_v62, 320  ;;  %v2264_v6 = vpop.f32.mrb[3].mxu1  ;;  %v2929_v11 = vrot.slane %v2914_v63, %v793_v56  ;;  %v2932_v13 = vrot.slane %v2914_v63, %v805_v0 }
 0x24d   : > { %v2935_v14 = vrot.slane %v2914_v63, %v817_v1  ;;  %v2939_v17 = vrot.slane %v2914_v63, %v829_v3  ;;  %v2942_v18 = vrot.slane %v2914_v63, %v841_v7  ;;  %v2945_v19 = vrot.slane %v2914_v63, %v853_v8  ;;  %v3001_v3 = vld [vmem:[#allocation10] sm:$0xff] }
 0x24e   : > { %v597_v15 = vmul.f32 1.442695, %v593_v4  ;;  %v594_v16 = vmin.f32 %v2921_v5, 20.0  ;;  %v2948_v20 = vrot.slane %v2914_v63, %v865_v9  ;;  %v2972_v38 = vrot.slane %v577_v58, %v865_v9  ;;  %v3003_v4 = vld [vmem:[#allocation10 + $0x8] sm:$0xff] }
 0x24f   : > { %vm595_vm8 = vcmp.gt.f32.partialorder %v2907_v59, 20.0  ;;  %vm596_vm10 = vcmp.gt.f32.partialorder %v2921_v5, 20.0 }
 0x250   : > { %2399 = vpow2.f32 %v597_v15  ;;  %v599_v21 = vmul.f32 1.442695, %v594_v16  ;;  %801 = vbcast.lane.b32.xlu1 %v2909_v61, 328  ;;  %789 = vbcast.lane.b32.xlu0 %v2912_v62, 328 }
 0x252   : > { %2401 = vpow2.f32 %v599_v21 }
 0x254   : > { %813 = vbcast.lane.b32.xlu1 %v2952_v22, 328  ;;  %809 = vbcast.lane.b32.xlu0 %v2952_v22, 320 }
 0x258   : > { %825 = vbcast.lane.b32.xlu1 %v2956_v23, 328  ;;  %821 = vbcast.lane.b32.xlu0 %v2956_v23, 320 }
 0x25a   : > { %v2400_v24 = vpop.eup %2399 }
 0x25b   : > { %v601_v26 = vadd.f32 1.0, %v2400_v24  ;;  %v604_v30 = vmul.f32 -0.5, %v2400_v24  ;;  %v607_v37 = vand.u32 2147483647, %v2400_v24 }
 0x25c   : > { %v2402_v27 = vpop.eup %2401  ;;  %837 = vbcast.lane.b32.xlu1 %v2960_v25, 328  ;;  %833 = vbcast.lane.b32.xlu0 %v2960_v25, 320 }
 0x25d   : > { %2403 = vlog2.f32 %v601_v26  ;;  %v610_v28 = vadd.f32 1.0, %v2402_v27  ;;  %v613_v34 = vmul.f32 -0.5, %v2402_v27  ;;  %v605_v35 = vadd.f32 1.0, %v604_v30 }
 0x25e   : > { %v616_v44 = vand.u32 2147483647, %v2402_v27  ;;  %vm608_vm7 = vcmp.lt.f32.partialorder %v607_v37, 0.0004427343 }
 0x25f   : > { %2405 = vlog2.f32 %v610_v28  ;;  %v614_v40 = vadd.f32 1.0, %v613_v34  ;;  %v606_v42 = vmul.f32 %v2400_v24, %v605_v35 }
 0x260   : > { %849 = vbcast.lane.b32.xlu1 %v2964_v29, 328  ;;  %845 = vbcast.lane.b32.xlu0 %v2964_v29, 320  ;;  %vm617_vm9 = vcmp.lt.f32.partialorder %v616_v44, 0.0004427343 }
 0x261   : > { %v615_v49 = vmul.f32 %v2402_v27, %v614_v40 }
 0x264   : > { %861 = vbcast.lane.b32.xlu1 %v2968_v33, 328  ;;  %857 = vbcast.lane.b32.xlu0 %v2968_v33, 320 }
 0x267   : > { %v2404_v39 = vpop.eup %2403 }
 0x268   : > { %v603_v41 = vmul.f32 0.6931472, %v2404_v39  ;;  %873 = vbcast.lane.b32.xlu1 %v2972_v38, 328  ;;  %869 = vbcast.lane.b32.xlu0 %v2972_v38, 320 }
 0x269   : > { %v2406_v45 = vpop.eup %2405 }
 0x26a   : > { %v609_v46 = vsel %vm608_vm7, %v606_v42, %v603_v41  ;;  %v612_v47 = vmul.f32 0.6931472, %v2406_v45 }
 0x26b   : > { %v619_v48 = vsel %vm595_vm8, %v2907_v59, %v609_v46 }
 0x26c   : > { %v626_v52 = vcombine.high %v619_v48, %v619_v48  ;;  %v633_v53 = vrot.slane %v619_v48, %v2975_v43  ;;  %1133 = vbcast.lane.b32.xlu1 %v2912_v62, 344  ;;  %1129 = vbcast.lane.b32.xlu0 %v2912_v62, 336  ;;  %v618_v54 = vsel %vm617_vm9, %v615_v49, %v612_v47 }
 0x26d   : > { %v2985_v56 = vmul.f32 %v619_v48, %v2891_v50  ;;  %v2998_v62 = vsel %vm596_vm10, %v2921_v5, %v618_v54 }
 0x26e   : > { %v2988_v57 = vrot.slane %v626_v52, %v2975_v43  ;;  %v641_v58 = vcombine.high %v633_v53, %v633_v53  ;;  %v649_v60 = vrot.slane %v633_v53, %v2975_v43  ;;  %v1287_v15 = vrot.slane %v2998_v62, %v2975_v43 }
 0x26f   : > { %v2994_v59 = vrot.slane %v2985_v56, %v2975_v43  ;;  %v1280_v30 = vcombine.high %v2998_v62, %v2998_v62 }
 0x270   : > { %v663_v0 = vrot.slane %v641_v58, %v2975_v43  ;;  %v671_v1 = vcombine.high %v649_v60, %v649_v60  ;;  %1141 = vbcast.lane.b32.xlu1 %v2909_v61, 344  ;;  %v678_v6 = vrot.slane %v649_v60, %v2901_v55  ;;  %1137 = vbcast.lane.b32.xlu0 %v2909_v61, 336 }
 0x271   : > { %v3009_v7 = vrot.slane %v2988_v57, %v2975_v43  ;;  %v1295_v34 = vcombine.high %v1287_v15, %v1287_v15  ;;  %v1303_v35 = vrot.slane %v1287_v15, %v2975_v43  ;;  %v3033_v44 = vrot.slane %v1280_v30, %v2975_v43 }
 0x272   : > { %v673_v8 = vcombine.high %v663_v0, %v663_v0  ;;  %v682_v9 = vrot.slane %v663_v0, %v2901_v55  ;;  %v686_v5 = vrot.slane %v671_v1, %v2901_v55  ;;  %v715_v21 = vmul.f32 %v678_v6, %v3001_v3 }
 0x273   : > { %v716_v24 = vmul.f32 %v678_v6, %v3003_v4  ;;  %v694_v27 = vrot.slane %v3009_v7, %v2901_v55  ;;  %v1317_v47 = vrot.slane %v1295_v34, %v2975_v43  ;;  %v1325_v52 = vcombine.high %v1303_v35, %v1303_v35 }
 0x274   : > { %v690_v16 = vrot.slane %v673_v8, %v2901_v55  ;;  %1149 = vbcast.lane.b32.xlu1 %v2952_v22, 344  ;;  %v717_v61 = vmul.f32 %v682_v9, %v3001_v3  ;;  %v718_v26 = vmul.f32 %v682_v9, %v3003_v4  ;;  %1145 = vbcast.lane.b32.xlu0 %v2952_v22, 336  ;;  %v731_v37 = vmul.f32 1.442695, %v715_v21 }
 0x275   : > { %v719_v28 = vmul.f32 %v686_v5, %v3001_v3  ;;  %v720_v31 = vmul.f32 %v686_v5, %v3003_v4  ;;  %v733_v39 = vmul.f32 1.442695, %v716_v24  ;;  %v723_v41 = vmul.f32 %v694_v27, %v3001_v3 }
 0x276   : > { %v721_v32 = vmul.f32 %v690_v16, %v3001_v3  ;;  %v722_v36 = vmul.f32 %v690_v16, %v3003_v4  ;;  %v735_v22 = vmul.f32 1.442695, %v717_v61  ;;  %v737_v40 = vmul.f32 1.442695, %v718_v26 }
 0x277   : > { %2407 = vpow2.f32 %v731_v37  ;;  %v739_v42 = vmul.f32 1.442695, %v719_v28  ;;  %v724_v45 = vmul.f32 %v694_v27, %v3003_v4  ;;  %v741_v46 = vmul.f32 1.442695, %v720_v31 }
 0x278   : > { %2409 = vpow2.f32 %v733_v39  ;;  %1157 = vbcast.lane.b32.xlu1 %v2956_v23, 344  ;;  %1153 = vbcast.lane.b32.xlu0 %v2956_v23, 336  ;;  %v743_v48 = vmul.f32 1.442695, %v721_v32  ;;  %v745_v49 = vmul.f32 1.442695, %v722_v36  ;;  %v1327_v53 = vcombine.high %v1317_v47, %v1317_v47 }
 0x279   : > { %2411 = vpow2.f32 %v735_v22  ;;  %v1332_v54 = vrot.slane %v1303_v35, %v2901_v55  ;;  %v1336_v58 = vrot.slane %v1317_v47, %v2901_v55  ;;  %v747_v60 = vmul.f32 1.442695, %v723_v41 }
 0x27a   : > { %2413 = vpow2.f32 %v737_v40  ;;  %v749_v0 = vmul.f32 1.442695, %v724_v45  ;;  %v3043_v1 = vrot.slane %v3033_v44, %v2975_v43  ;;  %v1340_v23 = vrot.slane %v1325_v52, %v2901_v55 }
 0x27b   : > { %2415 = vpow2.f32 %v739_v42  ;;  %v642_v6 = vcombine.high %v2988_v57, %v2988_v57  ;;  %v1344_v8 = vrot.slane %v1327_v53, %v2901_v55  ;;  %v1369_v9 = vmul.f32 %v1332_v54, %v3001_v3 }
 0x27c   : > { %2417 = vpow2.f32 %v741_v46  ;;  %1165 = vbcast.lane.b32.xlu1 %v2960_v25, 344  ;;  %1161 = vbcast.lane.b32.xlu0 %v2960_v25, 336  ;;  %v1370_v5 = vmul.f32 %v1332_v54, %v3003_v4  ;;  %v1371_v15 = vmul.f32 %v1336_v58, %v3001_v3  ;;  %v1372_v16 = vmul.f32 %v1336_v58, %v3003_v4 }
 0x27d   : > { %2419 = vpow2.f32 %v743_v48  ;;  %v1348_v25 = vrot.slane %v3043_v1, %v2901_v55  ;;  %v1373_v21 = vmul.f32 %v1340_v23, %v3001_v3  ;;  %v670_v24 = vrot.slane %v642_v6, %v2975_v43 }
 0x27e   : > { %2421 = vpow2.f32 %v745_v49  ;;  %v1374_v61 = vmul.f32 %v1340_v23, %v3003_v4  ;;  %v1375_v27 = vmul.f32 %v1344_v8, %v3001_v3  ;;  %v1385_v28 = vmul.f32 1.442695, %v1369_v9 }
 0x27f   : > { %2423 = vpow2.f32 %v747_v60  ;;  %v1387_v30 = vmul.f32 1.442695, %v1370_v5  ;;  %v1389_v31 = vmul.f32 1.442695, %v1371_v15  ;;  %v1376_v34 = vmul.f32 %v1344_v8, %v3003_v4 }
 0x280   : > { %2425 = vpow2.f32 %v749_v0  ;;  %1173 = vbcast.lane.b32.xlu1 %v2964_v29, 344  ;;  %1169 = vbcast.lane.b32.xlu0 %v2964_v29, 336  ;;  %v1391_v35 = vmul.f32 1.442695, %v1372_v16  ;;  %v891_v29 = vcombine.high %v2994_v59, %v2994_v59  ;;  %v1377_v37 = vmul.f32 %v1348_v25, %v3001_v3 }
 0x281   : > { %v2408_v57 = vpop.eup %2407  ;;  %2427 = vpow2.f32 %v1385_v28  ;;  %v1393_v39 = vmul.f32 1.442695, %v1373_v21  ;;  %v876_v22 = vcombine.high %v2985_v56, %v2985_v56  ;;  %v672_v41 = vcombine.high %v3009_v7, %v3009_v7 }
 0x282   : > { %v2410_v26 = vpop.eup %2409  ;;  %763 = vst.msk [vmem:[#allocation5] sm:$0xff] %vm446_vm5, %v2408_v57  ;;  %v1378_v42 = vmul.f32 %v1348_v25, %v3003_v4  ;;  %2429 = vpow2.f32 %v1387_v30  ;;  %v1395_v45 = vmul.f32 1.442695, %v1374_v61  ;;  %v674_v47 = vcombine.high %v670_v24, %v670_v24 }
 0x283   : > { %v2412_v32 = vpop.eup %2411  ;;  %764 = vst.msk [vmem:[#allocation5 + $0x8] sm:$0xff] %vm446_vm5, %v2410_v26  ;;  %v698_v48 = vrot.slane %v670_v24, %v2901_v55  ;;  %2431 = vpow2.f32 %v1389_v31  ;;  %v1397_v49 = vmul.f32 1.442695, %v1375_v27  ;;  %v1399_v56 = vmul.f32 1.442695, %v1376_v34 }
 0x284   : > { %v2414_v36 = vpop.eup %2413  ;;  %765 = vst.msk [vmem:[#allocation5 + $0x10] sm:$0xff] %vm446_vm5, %v2412_v32  ;;  %2433 = vpow2.f32 %v1391_v35  ;;  %1181 = vbcast.lane.b32.xlu1 %v2968_v33, 344  ;;  %1177 = vbcast.lane.b32.xlu0 %v2968_v33, 336  ;;  %v3082_v7 = vrot.slane %v891_v29, %v2975_v43  ;;  %v3086_v53 = vrot.slane %v2994_v59, %v2975_v43  ;;  %v1401_v60 = vmul.f32 1.442695, %v1377_v37 }
 0x285   : > { %v2416_v40 = vpop.eup %2415  ;;  %766 = vst.msk [vmem:[#allocation5 + $0x18] sm:$0xff] %vm446_vm5, %v2414_v36  ;;  %v1296_v58 = vcombine.high %v3033_v44, %v3033_v44  ;;  %2435 = vpow2.f32 %v1393_v39  ;;  %v890_v0 = vrot.slane %v876_v22, %v2975_v43  ;;  %v1403_v33 = vmul.f32 1.442695, %v1378_v42 }
 0x286   : > { %v2418_v46 = vpop.eup %2417  ;;  %767 = vst.msk [vmem:[#allocation5 + $0x20] sm:$0xff] %vm446_vm5, %v2416_v40  ;;  %2437 = vpow2.f32 %v1395_v45  ;;  %v702_v8 = vrot.slane %v672_v41, %v2901_v55  ;;  %v3103_v44 = vrot.slane %v2914_v63, %v2901_v55  ;;  %v706_v5 = vrot.slane %v674_v47, %v2901_v55 }
 0x287   : > { %v2420_v52 = vpop.eup %2419  ;;  %768 = vst.msk [vmem:[#allocation5 + $0x28] sm:$0xff] %vm446_vm5, %v2418_v46  ;;  %2439 = vpow2.f32 %v1397_v49  ;;  %v3096_v59 = vrot.slane %v890_v0, %v2975_v43  ;;  %v892_v9 = vcombine.high %v890_v0, %v890_v0  ;;  %v725_v15 = vmul.f32 %v698_v48, %v3001_v3 }
 0x288   : > { %v2422_v54 = vpop.eup %2421  ;;  %769 = vst.msk [vmem:[#allocation5 + $0x30] sm:$0xff] %vm446_vm5, %v2420_v52  ;;  %2441 = vpow2.f32 %v1399_v56  ;;  %1189 = vbcast.lane.b32.xlu1 %v2972_v38, 344  ;;  %1185 = vbcast.lane.b32.xlu0 %v2972_v38, 336  ;;  %v1324_v16 = vrot.slane %v1296_v58, %v2975_v43  ;;  %v726_v21 = vmul.f32 %v698_v48, %v3003_v4 }
 0x289   : > { %v2424_v23 = vpop.eup %2423  ;;  %770 = vst.msk [vmem:[#allocation5 + $0x38] sm:$0xff] %vm446_vm5, %v2422_v54  ;;  %2443 = vpow2.f32 %v1401_v60  ;;  %v3108_v25 = vld [vmem:[#allocation5] sm:$0xff]  ;;  %v3114_v38 = vrot.slane %v892_v9, %v2975_v43  ;;  %v624_v63 = vmul.f32 %v2998_v62, %v2893_v51  ;;  %v727_v61 = vmul.f32 %v702_v8, %v3001_v3 }
 0x28a   : > { %v2426_v6 = vpop.eup %2425  ;;  %771 = vst.msk [vmem:[#allocation5 + $0x40] sm:$0xff] %vm446_vm5, %v2424_v23  ;;  %2445 = vpow2.f32 %v1403_v33  ;;  %v3111_v57 = vld [vmem:[#allocation5 + $0x8] sm:$0xff]  ;;  %v1326_v26 = vcombine.high %v3043_v1, %v3043_v1  ;;  %v728_v30 = vmul.f32 %v702_v8, %v3003_v4  ;;  %v1328_v32 = vcombine.high %v1324_v16, %v1324_v16 }
 0x28b   : > { %772 = vst.msk [vmem:[#allocation5 + $0x48] sm:$0xff] %vm446_vm5, %v2426_v6  ;;  %v2428_v24 = vpop.eup %2427  ;;  %v3121_v27 = vld [vmem:[#allocation5 + $0x10] sm:$0xff]  ;;  %v1352_v34 = vrot.slane %v1324_v16, %v2901_v55  ;;  %v751_v35 = vmul.f32 1.442695, %v725_v15  ;;  %v729_v29 = vmul.f32 %v706_v5, %v3001_v3  ;;  %v753_v39 = vmul.f32 1.442695, %v726_v21 }
 0x28c   : > { %v2430_v28 = vpop.eup %2429  ;;  %1443 = vbcast.lane.b32.xlu1 %v3103_v44, 328  ;;  %1439 = vbcast.lane.b32.xlu0 %v3103_v44, 320  ;;  %1417 = vst.msk [vmem:[#allocation5] sm:$0xff] %vm446_vm5, %v2428_v24  ;;  %v3127_v31 = vld [vmem:[#allocation5 + $0x18] sm:$0xff]  ;;  %v730_v22 = vmul.f32 %v706_v5, %v3003_v4  ;;  %v1537_v40 = vrot.slane %v624_v63, %v2975_v43  ;;  %v755_v47 = vmul.f32 1.442695, %v727_v61 }
 0x28d   : > { %v2432_v62 = vpop.eup %2431  ;;  %1418 = vst.msk [vmem:[#allocation5 + $0x8] sm:$0xff] %vm446_vm5, %v2430_v28  ;;  %v3131_v1 = vld [vmem:[#allocation5 + $0x20] sm:$0xff]  ;;  %v1530_v41 = vcombine.high %v624_v63, %v624_v63  ;;  %v1356_v45 = vrot.slane %v1326_v26, %v2901_v55  ;;  %v757_v52 = vmul.f32 1.442695, %v728_v30  ;;  %v1360_v0 = vrot.slane %v1328_v32, %v2901_v55 }
 0x28e   : > { %v2434_v36 = vpop.eup %2433  ;;  %v3134_v37 = vld [vmem:[#allocation5 + $0x28] sm:$0xff]  ;;  %1419 = vst.msk [vmem:[#allocation5 + $0x10] sm:$0xff] %vm446_vm5, %v2432_v62  ;;  %v3149_v56 = vrot.slane %v1537_v40, %v2975_v43  ;;  %v1545_v54 = vcombine.high %v1537_v40, %v1537_v40  ;;  %v1379_v23 = vmul.f32 %v1352_v34, %v3001_v3  ;;  %2447 = vpow2.f32 %v751_v35 }
 0x28f   : > { %v2436_v42 = vpop.eup %2435  ;;  %1420 = vst.msk [vmem:[#allocation5 + $0x18] sm:$0xff] %vm446_vm5, %v2434_v36  ;;  %v3141_v46 = vld [vmem:[#allocation5 + $0x30] sm:$0xff]  ;;  %v1544_v58 = vrot.slane %v1530_v41, %v2975_v43  ;;  %v759_v6 = vmul.f32 1.442695, %v729_v29  ;;  %v1380_v9 = vmul.f32 %v1352_v34, %v3003_v4  ;;  %2449 = vpow2.f32 %v753_v39 }
 0x290   : > { %v2438_v48 = vpop.eup %2437  ;;  %1455 = vbcast.lane.b32.xlu1 %v2929_v11, 328  ;;  %1451 = vbcast.lane.b32.xlu0 %v2929_v11, 320  ;;  %1421 = vst.msk [vmem:[#allocation5 + $0x20] sm:$0xff] %vm446_vm5, %v2436_v42  ;;  %v3146_v49 = vld [vmem:[#allocation5 + $0x38] sm:$0xff]  ;;  %v761_v15 = vmul.f32 1.442695, %v730_v22  ;;  %v3162_v16 = vrot.slane %v1545_v54, %v2975_v43  ;;  %v1381_v63 = vmul.f32 %v1356_v45, %v3001_v3  ;;  %2451 = vpow2.f32 %v755_v47 }
 0x291   : > { %v2440_v60 = vpop.eup %2439  ;;  %1422 = vst.msk [vmem:[#allocation5 + $0x28] sm:$0xff] %vm446_vm5, %v2438_v48  ;;  %v3155_v33 = vld [vmem:[#allocation5 + $0x40] sm:$0xff]  ;;  %v3167_v24 = vrot.slane %v1544_v58, %v2975_v43  ;;  %v1546_v61 = vcombine.high %v1544_v58, %v1544_v58  ;;  %v1382_v28 = vmul.f32 %v1356_v45, %v3003_v4  ;;  %2453 = vpow2.f32 %v757_v52 }
 0x292   : > { %v2442_v8 = vpop.eup %2441  ;;  %1423 = vst.msk [vmem:[#allocation5 + $0x30] sm:$0xff] %vm446_vm5, %v2440_v60  ;;  %v3159_v5 = vld [vmem:[#allocation5 + $0x48] sm:$0xff]  ;;  %v1383_v30 = vmul.f32 %v1360_v0, %v3001_v3  ;;  %v1405_v62 = vmul.f32 1.442695, %v1379_v23  ;;  %2455 = vpow2.f32 %v759_v6  ;;  %v1384_v34 = vmul.f32 %v1360_v0, %v3003_v4 }
 0x293   : > { %v2444_v21 = vpop.eup %2443  ;;  %1424 = vst.msk [vmem:[#allocation5 + $0x38] sm:$0xff] %vm446_vm5, %v2442_v8  ;;  %v3176_v32 = vrot.slane %v1546_v61, %v2975_v43  ;;  %v1407_v35 = vmul.f32 1.442695, %v1380_v9  ;;  %2457 = vpow2.f32 %v761_v15  ;;  %v1409_v29 = vmul.f32 1.442695, %v1381_v63 }
 0x294   : > { %v2446_v26 = vpop.eup %2445  ;;  %1467 = vbcast.lane.b32.xlu1 %v2932_v13, 328  ;;  %1463 = vbcast.lane.b32.xlu0 %v2932_v13, 320  ;;  %1425 = vst.msk [vmem:[#allocation5 + $0x40] sm:$0xff] %vm446_vm5, %v2444_v21  ;;  %v1411_v36 = vmul.f32 1.442695, %v1382_v28  ;;  %2459 = vpow2.f32 %v1405_v62  ;;  %v1969_v45 = vsub.f32 0.0, %v2870_v10 }
 0x295   : > { %1426 = vst.msk [vmem:[#allocation5 + $0x48] sm:$0xff] %vm446_vm5, %v2446_v26  ;;  %v1413_v39 = vmul.f32 1.442695, %v1383_v30  ;;  %2461 = vpow2.f32 %v1407_v35  ;;  %v1415_v3 = vmul.f32 1.442695, %v1384_v34  ;;  %v1970_v48 = vsub.f32 0.0, %v2874_v12 }
 0x296   : > { %2463 = vpow2.f32 %v1409_v29  ;;  %v1971_v6 = vmul.f32 1.442695, %v1969_v45  ;;  %v921_v29 = vcombine.high %v3086_v53, %v3086_v53 }
 0x297   : > { %2465 = vpow2.f32 %v1411_v36  ;;  %v1973_v15 = vmul.f32 1.442695, %v1970_v48 }
 0x298   : > { %1479 = vbcast.lane.b32.xlu1 %v2935_v14, 328  ;;  %1475 = vbcast.lane.b32.xlu0 %v2935_v14, 320  ;;  %v2448_v22 = vpop.eup %2447  ;;  %2467 = vpow2.f32 %v1413_v39 }
 0x299   : > { %v2450_v40 = vpop.eup %2449  ;;  %773 = vst.msk [vmem:[#allocation5 + $0x50] sm:$0xff] %vm446_vm5, %v2448_v22  ;;  %2469 = vpow2.f32 %v1415_v3 }
 0x29a   : > { %v2452_v43 = vpop.eup %2451  ;;  %774 = vst.msk [vmem:[#allocation5 + $0x58] sm:$0xff] %vm446_vm5, %v2450_v40  ;;  %2471 = vpow2.f32 %v1971_v6 }
 0x29b   : > { %v2454_v4 = vpop.eup %2453  ;;  %775 = vst.msk [vmem:[#allocation5 + $0x60] sm:$0xff] %vm446_vm5, %v2452_v43  ;;  %2473 = vpow2.f32 %v1973_v15  ;;  %v998_v15 = vld [vmem:[#allocation2 + $0x8] sm:$0xff] }
 0x29c   : > { %1491 = vbcast.lane.b32.xlu1 %v2939_v17, 328  ;;  %1487 = vbcast.lane.b32.xlu0 %v2939_v17, 320  ;;  %v2456_v41 = vpop.eup %2455  ;;  %776 = vst.msk [vmem:[#allocation5 + $0x68] sm:$0xff] %vm446_vm5, %v2454_v4  ;;  %v936_v4 = vrot.slane %v921_v29, %v2901_v55 }
 0x29d   : > { %v2458_v42 = vpop.eup %2457  ;;  %777 = vst.msk [vmem:[#allocation5 + $0x70] sm:$0xff] %vm446_vm5, %v2456_v41  ;;  %v923_v41 = vcombine.high %v3082_v7, %v3082_v7 }
 0x29e   : > { %778 = vst.msk [vmem:[#allocation5 + $0x78] sm:$0xff] %vm446_vm5, %v2458_v42  ;;  %v2460_v47 = vpop.eup %2459 }
 0x29f   : > { %v2462_v54 = vpop.eup %2461  ;;  %v940_v48 = vrot.slane %v923_v41, %v2901_v55 }
 0x2a0   : > { %1503 = vbcast.lane.b32.xlu1 %v2942_v18, 328  ;;  %1499 = vbcast.lane.b32.xlu0 %v2942_v18, 320  ;;  %v3193_v52 = vld [vmem:[#allocation5 + $0x50] sm:$0xff]  ;;  %v2464_v60 = vpop.eup %2463 }
 0x2a1   : > { %v3197_v58 = vld [vmem:[#allocation5 + $0x58] sm:$0xff]  ;;  %1427 = vst.msk [vmem:[#allocation5 + $0x50] sm:$0xff] %vm446_vm5, %v2460_v47  ;;  %v2466_v23 = vpop.eup %2465 }
 0x2a2   : > { %1428 = vst.msk [vmem:[#allocation5 + $0x58] sm:$0xff] %vm446_vm5, %v2462_v54  ;;  %v3201_v0 = vld [vmem:[#allocation5 + $0x60] sm:$0xff]  ;;  %v2468_v9 = vpop.eup %2467 }
 0x2a3   : > { %v3203_v8 = vld [vmem:[#allocation5 + $0x68] sm:$0xff]  ;;  %1429 = vst.msk [vmem:[#allocation5 + $0x60] sm:$0xff] %vm446_vm5, %v2464_v60  ;;  %v2470_v63 = vpop.eup %2469 }
 0x2a4   : > { %1515 = vbcast.lane.b32.xlu1 %v2945_v19, 328  ;;  %1511 = vbcast.lane.b32.xlu0 %v2945_v19, 320  ;;  %1430 = vst.msk [vmem:[#allocation5 + $0x68] sm:$0xff] %vm446_vm5, %v2466_v23  ;;  %v3207_v21 = vld [vmem:[#allocation5 + $0x70] sm:$0xff]  ;;  %v2472_v26 = vpop.eup %2471 }
 0x2a5   : > { %v3211_v61 = vld [vmem:[#allocation5 + $0x78] sm:$0xff]  ;;  %1431 = vst.msk [vmem:[#allocation5 + $0x70] sm:$0xff] %vm446_vm5, %v2468_v9  ;;  %v2474_v28 = vpop.eup %2473  ;;  %v1975_v30 = vadd.f32 1.0, %v2472_v26 }
 0x2a6   : > { %1432 = vst.msk [vmem:[#allocation5 + $0x78] sm:$0xff] %vm446_vm5, %v2470_v63  ;;  %v1976_v62 = vadd.f32 1.0, %v2474_v28  ;;  %v997_v9 = vld [vmem:[#allocation2] sm:$0xff] }
 0x2a7   : > { %2475 = vrcp.f32 %v1975_v30 }
 0x2a8   : > { %1527 = vbcast.lane.b32.xlu1 %v2948_v20, 328  ;;  %1523 = vbcast.lane.b32.xlu0 %v2948_v20, 320  ;;  %2477 = vrcp.f32 %v1976_v62  ;;  %v1001_v62 = vmul.f32 %v3108_v25, %v997_v9  ;;  %v2387_v9 = vld [vmem:[%s3470_s7] sm:$0xff]  }
 0x2a9   : > { %2266 = vmatpush3.bf16.msra.mxu0 %v2387_v9 }
 0x2aa   : > { %2267 = vmatprep.subr.bf16.mxu0 %v2646_v2 }
 0x2ac   : > { %1773 = vbcast.lane.b32.xlu1 %v3103_v44, 344  ;;  %1769 = vbcast.lane.b32.xlu0 %v3103_v44, 336  ;;  %v932_v44 = vrot.slane %v3082_v7, %v2901_v55 }
 0x2b0   : > { %1781 = vbcast.lane.b32.xlu1 %v2929_v11, 344  ;;  %1777 = vbcast.lane.b32.xlu0 %v2929_v11, 336  ;;  %v928_v11 = vrot.slane %v3086_v53, %v2901_v55 }
 0x2b1   : > { %v2476_v60 = vpop.eup %2475 }
 0x2b2   : > { %v2478_v6 = vpop.eup %2477  ;;  %v1981_v29 = vmul.f32 %v2476_v60, %v2870_v10 }
 0x2b4   : > { %1789 = vbcast.lane.b32.xlu1 %v2932_v13, 344  ;;  %1785 = vbcast.lane.b32.xlu0 %v2932_v13, 336 }
 0x2b8   : > { %1797 = vbcast.lane.b32.xlu1 %v2935_v14, 344  ;;  %1793 = vbcast.lane.b32.xlu0 %v2935_v14, 336 }
 0x2bc   : > { %1805 = vbcast.lane.b32.xlu1 %v2939_v17, 344  ;;  %1801 = vbcast.lane.b32.xlu0 %v2939_v17, 336 }
 0x2be   : > { %v798_v34 = vpop.permute.xlu1 %797  ;;  %v786_v35 = vpop.permute.xlu0 %785 }
 0x2bf   : > { %v967_v14 = vmul.f32 %v932_v44, %v798_v34  ;;  %v965_v39 = vmul.f32 %v928_v11, %v786_v35  ;;  %v1002_v34 = vmul.f32 %v3111_v57, %v998_v15  ;;  %v948_v57 = vrot.slane %v3114_v38, %v2901_v55 }
 0x2c0   : > { %1813 = vbcast.lane.b32.xlu1 %v2942_v18, 344  ;;  %1809 = vbcast.lane.b32.xlu0 %v2942_v18, 336 }
 0x2c2   : > { %v802_v13 = vpop.permute.xlu1 %801  ;;  %v790_v36 = vpop.permute.xlu0 %789 }
 0x2c3   : > { %v968_v3 = vmul.f32 %v932_v44, %v802_v13  ;;  %v966_v22 = vmul.f32 %v928_v11, %v790_v36  ;;  %v1982_v13 = vmul.f32 %v2478_v6, %v2874_v12 }
 0x2c4   : > { %1821 = vbcast.lane.b32.xlu1 %v2945_v19, 344  ;;  %1817 = vbcast.lane.b32.xlu0 %v2945_v19, 336  ;;  %v944_v19 = vrot.slane %v3096_v59, %v2901_v55 }
 0x2c5   : > { %v982_v40 = vpack.c.bf16 %v968_v3, %v967_v14  ;;  %v981_v43 = vpack.c.bf16 %v966_v22, %v965_v39 }
 0x2c6   : > { %v814_v53 = vpop.permute.xlu1 %813  ;;  %v810_v42 = vpop.permute.xlu0 %809 }
 0x2c7   : > { %990 = vst.msk [vmem:[#allocation6 + $0x8] sm:$0xff] %vm446_vm5, %v982_v40  ;;  %989 = vst.msk [vmem:[#allocation6] sm:$0xff] %vm446_vm5, %v981_v43  ;;  %v970_v17 = vmul.f32 %v936_v4, %v814_v53  ;;  %v969_v45 = vmul.f32 %v936_v4, %v810_v42  ;;  %v922_v43 = vcombine.high %v3096_v59, %v3096_v59 }
 0x2c8   : > { %1829 = vbcast.lane.b32.xlu1 %v2948_v20, 344  ;;  %1825 = vbcast.lane.b32.xlu0 %v2948_v20, 336 }
 0x2c9   : > { %v983_v47 = vpack.c.bf16 %v970_v17, %v969_v45 }
 0x2ca   : > { %v826_v7 = vpop.permute.xlu1 %825  ;;  %v822_v54 = vpop.permute.xlu0 %821 }
 0x2cb   : > { %991 = vst.msk [vmem:[#allocation6 + $0x10] sm:$0xff] %vm446_vm5, %v983_v47  ;;  %v972_v18 = vmul.f32 %v940_v48, %v826_v7  ;;  %v971_v23 = vmul.f32 %v940_v48, %v822_v54  ;;  %v924_v48 = vcombine.high %v3114_v38, %v3114_v38  ;;  %v952_v54 = vrot.slane %v922_v43, %v2901_v55 }
 0x2cc   : > { %1987 = vrot.lane.b32.xlu1 %v1982_v13, %s2649_s26  ;;  %1985 = vrot.lane.b32.xlu0 %v1981_v29, %s2649_s26 }
 0x2cd   : > { %v984_v63 = vpack.c.bf16 %v972_v18, %v971_v23 }
 0x2ce   : > { %v1003_v26 = vld [vmem:[#allocation6] sm:$0xff]  ;;  %v838_v28 = vpop.permute.xlu1 %837  ;;  %v834_v30 = vpop.permute.xlu0 %833  ;;  %v1016_v11 = vld [vmem:[#allocation6 + $0x8] sm:$0xff] }
 0x2cf   : > { %v1004_v35 = vunpack.c.l.bf16 %v1003_v26  ;;  %v1005_v44 = vunpack.c.h.bf16 %v1003_v26  ;;  %992 = vst.msk [vmem:[#allocation6 + $0x18] sm:$0xff] %vm446_vm5, %v984_v63  ;;  %v974_v36 = vmul.f32 %v944_v19, %v838_v28  ;;  %v973_v20 = vmul.f32 %v944_v19, %v834_v30 }
 0x2d0   : > { %v1017_v3 = vunpack.c.l.bf16 %v1016_v11  ;;  %v1018_v41 = vunpack.c.h.bf16 %v1016_v11  ;;  %v956_v19 = vrot.slane %v924_v48, %v2901_v55 }
 0x2d1   : > { %v1006_v14 = vadd.f32 %v1004_v35, %v1001_v62  ;;  %v1007_v39 = vadd.f32 %v1005_v44, %v1002_v34  ;;  %v985_v25 = vpack.c.bf16 %v974_v36, %v973_v20 }
 0x2d2   : > { %v850_v22 = vpop.permute.xlu1 %849  ;;  %v846_v40 = vpop.permute.xlu0 %845  ;;  %v1029_v53 = vld [vmem:[#allocation6 + $0x10] sm:$0xff] }
 0x2d3   : > { %v1008_v10 = vpack.c.bf16 %v1007_v39, %v1006_v14  ;;  %v1013_v12 = vmul.f32 %v3121_v27, %v1006_v14  ;;  %v1014_v4 = vmul.f32 %v3127_v31, %v1007_v39  ;;  %993 = vst.msk [vmem:[#allocation6 + $0x20] sm:$0xff] %vm446_vm5, %v985_v25  ;;  %v976_v42 = vmul.f32 %v948_v57, %v850_v22 }
 0x2d4   : > { %v975_v17 = vmul.f32 %v948_v57, %v846_v40  ;;  %v1030_v18 = vunpack.c.l.bf16 %v1029_v53  ;;  %v1031_v23 = vunpack.c.h.bf16 %v1029_v53  ;;  %v2389_v57 = vld [vmem:[%s3470_s7 + $0x10] sm:$0xff]  }
 0x2d5   : > { %1009 = vst.msk [vmem:[#allocation6] sm:$0xff] %vm446_vm5, %v1008_v10  ;;  %v1019_v45 = vadd.f32 %v1017_v3, %v1013_v12  ;;  %v1020_v47 = vadd.f32 %v1018_v41, %v1014_v4 }
 0x2d6   : > { %v986_v7 = vpack.c.bf16 %v976_v42, %v975_v17  ;;  %v862_v59 = vpop.permute.xlu1 %861  ;;  %v858_v27 = vpop.permute.xlu0 %857  ;;  %v1042_v6 = vld [vmem:[#allocation6 + $0x18] sm:$0xff] }
 0x2d7   : > { %v1026_v31 = vmul.f32 %v3131_v1, %v1019_v45  ;;  %v1027_v60 = vmul.f32 %v3134_v37, %v1020_v47  ;;  %v978_v15 = vmul.f32 %v952_v54, %v862_v59  ;;  %v977_v38 = vmul.f32 %v952_v54, %v858_v27  ;;  %v2388_v1 = vld [vmem:[%s3470_s7 + $0x8] sm:$0xff]  }
 0x2d8   : > { %994 = vst.msk [vmem:[#allocation6 + $0x28] sm:$0xff] %vm446_vm5, %v986_v7  ;;  %v1021_v63 = vpack.c.bf16 %v1020_v47, %v1019_v45  ;;  %v1043_v37 = vunpack.c.l.bf16 %v1042_v6  ;;  %v1044_v30 = vunpack.c.h.bf16 %v1042_v6  ;;  %2268 = vmatpush3.bf16.msra.mxu0 %v2388_v1 }
 0x2d9   : > { %v1032_v26 = vadd.f32 %v1030_v18, %v1026_v31  ;;  %v1033_v28 = vadd.f32 %v1031_v23, %v1027_v60  ;;  %v987_v62 = vpack.c.bf16 %v978_v15, %v977_v38  ;;  %2269 = vmatprep.subr.bf16.mxu0 %v2646_v2 }
 0x2da   : > { %v874_v34 = vpop.permute.xlu1 %873  ;;  %v870_v35 = vpop.permute.xlu0 %869  ;;  %1022 = vst.msk [vmem:[#allocation6 + $0x8] sm:$0xff] %vm446_vm5, %v1021_v63  ;;  %v1055_v13 = vld [vmem:[#allocation6 + $0x20] sm:$0xff] }
 0x2db   : > { %v1034_v44 = vpack.c.bf16 %v1033_v28, %v1032_v26  ;;  %v1039_v11 = vmul.f32 %v3141_v46, %v1032_v26  ;;  %v1040_v29 = vmul.f32 %v3146_v49, %v1033_v28  ;;  %v980_v36 = vmul.f32 %v956_v19, %v874_v34  ;;  %995 = vst.msk [vmem:[#allocation6 + $0x30] sm:$0xff] %vm446_vm5, %v987_v62 }
 0x2dc   : > { %v979_v20 = vmul.f32 %v956_v19, %v870_v35  ;;  %v1103_v14 = vld [vmem:[#allocation6] sm:$0xff]  ;;  %v1056_v46 = vunpack.c.l.bf16 %v1055_v13  ;;  %v1057_v40 = vunpack.c.h.bf16 %v1055_v13  ;;  %2270 = vmatpush3.bf16.msra.mxu0 %v2389_v57 }
 0x2dd   : > { %1035 = vst.msk [vmem:[#allocation6 + $0x10] sm:$0xff] %vm446_vm5, %v1034_v44  ;;  %v1045_v39 = vadd.f32 %v1043_v37, %v1039_v11  ;;  %v1046_v3 = vadd.f32 %v1044_v30, %v1040_v29  ;;  %v1112_v25 = vunpack.c.h.bf16 %v1103_v14  ;;  %v1111_v22 = vunpack.c.l.bf16 %v1103_v14  ;;  %2271 = vmatprep.subr.bf16.mxu0 %v2646_v2 }
 0x2de   : > { %v988_v49 = vpack.c.bf16 %v980_v36, %v979_v20  ;;  %v1134_v43 = vpop.permute.xlu1 %1133  ;;  %v1130_v10 = vpop.permute.xlu0 %1129 }
 0x2df   : > { %v1047_v12 = vpack.c.bf16 %v1046_v3, %v1045_v39  ;;  %v1052_v4 = vmul.f32 %v3155_v33, %v1045_v39  ;;  %v1053_v41 = vmul.f32 %v3159_v5, %v1046_v3  ;;  %v1068_v53 = vld [vmem:[#allocation6 + $0x28] sm:$0xff]  ;;  %v1192_v42 = vmul.f32 %v1134_v43, %v1112_v25 }
 0x2e0   : > { %996 = vst.msk [vmem:[#allocation6 + $0x38] sm:$0xff] %vm446_vm5, %v988_v49  ;;  %v1191_v17 = vmul.f32 %v1130_v10, %v1111_v22  ;;  %v1069_v48 = vunpack.c.l.bf16 %v1068_v53  ;;  %v2390_v33 = vld [vmem:[%s3470_s7 + $0x18] sm:$0xff]   ;;  %v1070_v54 = vunpack.c.h.bf16 %v1068_v53 }
 0x2e1   : > { %1048 = vst.msk [vmem:[#allocation6 + $0x18] sm:$0xff] %vm446_vm5, %v1047_v12  ;;  %v1058_v45 = vadd.f32 %v1056_v46, %v1052_v4  ;;  %v1059_v47 = vadd.f32 %v1057_v40, %v1053_v41  ;;  %v1208_v7 = vsel %vm446_vm5, %v1192_v42, 0.0  ;;  %v1104_v59 = vld [vmem:[#allocation6 + $0x8] sm:$0xff]  ;;  %2272 = vmatpush3.bf16.msra.mxu0 %v2390_v33 }
 0x2e2   : > { %v1207_v5 = vsel %vm446_vm5, %v1191_v17, 0.0  ;;  %v1142_v27 = vpop.permute.xlu1 %1141  ;;  %v1114_v31 = vunpack.c.h.bf16 %v1104_v59  ;;  %v1113_v60 = vunpack.c.l.bf16 %v1104_v59  ;;  %v1081_v9 = vld [vmem:[#allocation6 + $0x30] sm:$0xff]  ;;  %v1138_v38 = vpop.permute.xlu0 %1137 }
 0x2e3   : > { %v1060_v18 = vpack.c.bf16 %v1059_v47, %v1058_v45  ;;  %v1065_v23 = vmul.f32 %v3193_v52, %v1058_v45  ;;  %v1066_v6 = vmul.f32 %v3197_v58, %v1059_v47  ;;  %v1209_v15 = vadd.f32 %v1208_v7, %v1207_v5 }
 0x2e4   : > { %v1082_v63 = vunpack.c.l.bf16 %v1081_v9  ;;  %v1194_v26 = vmul.f32 %v1142_v27, %v1114_v31  ;;  %v1193_v28 = vmul.f32 %v1138_v38, %v1113_v60  ;;  %v1105_v19 = vld [vmem:[#allocation6 + $0x10] sm:$0xff]  ;;  %v1083_v2 = vunpack.c.h.bf16 %v1081_v9 }
 0x2e5   : > { %1061 = vst.msk [vmem:[#allocation6 + $0x20] sm:$0xff] %vm446_vm5, %v1060_v18  ;;  %v1071_v1 = vadd.f32 %v1069_v48, %v1065_v23  ;;  %v1072_v37 = vadd.f32 %v1070_v54, %v1066_v6  ;;  %v1210_v30 = vrot.slane %v1209_v15, 4  ;;  %v1116_v62 = vunpack.c.h.bf16 %v1105_v19 }
 0x2e6   : > { %v1217_v34 = vsel %vm446_vm5, %v1194_v26, 0.0  ;;  %v1216_v52 = vsel %vm446_vm5, %v1193_v28, 0.0  ;;  %v1150_v58 = vpop.permute.xlu1 %1149  ;;  %v1115_v35 = vunpack.c.l.bf16 %v1105_v19  ;;  %v1146_v20 = vpop.permute.xlu0 %1145 }
 0x2e7   : > { %v1073_v44 = vpack.c.bf16 %v1072_v37, %v1071_v1  ;;  %v1078_v11 = vmul.f32 %v3201_v0, %v1071_v1  ;;  %v1079_v29 = vmul.f32 %v3203_v8, %v1072_v37  ;;  %v1094_v13 = vld [vmem:[#allocation6 + $0x38] sm:$0xff]  ;;  %v1211_v36 = vadd.f32 %v1210_v30, %v1209_v15 }
 0x2e8   : > { %v1095_v14 = vunpack.c.l.bf16 %v1094_v13  ;;  %v1218_v39 = vadd.f32 %v1217_v34, %v1216_v52  ;;  %v1196_v3 = vmul.f32 %v1150_v58, %v1116_v62  ;;  %v1106_v25 = vld [vmem:[#allocation6 + $0x18] sm:$0xff]  ;;  %v1195_v40 = vmul.f32 %v1146_v20, %v1115_v35 }
 0x2e9   : > { %1074 = vst.msk [vmem:[#allocation6 + $0x28] sm:$0xff] %vm446_vm5, %v1073_v44  ;;  %v1084_v22 = vadd.f32 %v1082_v63, %v1078_v11  ;;  %v1085_v57 = vadd.f32 %v1083_v2, %v1079_v29  ;;  %v1212_v46 = vrot.slane %v1211_v36, 2  ;;  %v1118_v10 = vunpack.c.h.bf16 %v1106_v25 }
 0x2ea   : > { %v1219_v49 = vrot.slane %v1218_v39, 4  ;;  %v1226_v43 = vsel %vm446_vm5, %v1196_v3, 0.0  ;;  %v1117_v0 = vunpack.c.l.bf16 %v1106_v25  ;;  %v1096_v41 = vunpack.c.h.bf16 %v1094_v13  ;;  %v1158_v59 = vpop.permute.xlu1 %1157  ;;  %v1154_v33 = vpop.permute.xlu0 %1153 }
 0x2eb   : > { %v1086_v12 = vpack.c.bf16 %v1085_v57, %v1084_v22  ;;  %v1091_v8 = vmul.f32 %v3207_v21, %v1084_v22  ;;  %v1092_v4 = vmul.f32 %v3211_v61, %v1085_v57  ;;  %v1213_v53 = vadd.f32 %v1212_v46, %v1211_v36 }
 0x2ec   : > { %v1220_v42 = vadd.f32 %v1219_v49, %v1218_v39  ;;  %v1225_v17 = vsel %vm446_vm5, %v1195_v40, 0.0  ;;  %v1107_v45 = vld [vmem:[#allocation6 + $0x20] sm:$0xff]  ;;  %v1198_v5 = vmul.f32 %v1158_v59, %v1118_v10  ;;  %v1197_v27 = vmul.f32 %v1154_v33, %v1117_v0 }
 0x2ed   : > { %1087 = vst.msk [vmem:[#allocation6 + $0x30] sm:$0xff] %vm446_vm5, %v1086_v12  ;;  %v1097_v47 = vadd.f32 %v1095_v14, %v1091_v8  ;;  %v1098_v48 = vadd.f32 %v1096_v41, %v1092_v4  ;;  %v1227_v7 = vadd.f32 %v1226_v43, %v1225_v17  ;;  %v1120_v31 = vunpack.c.h.bf16 %v1107_v45 }
 0x2ee   : > { %v1221_v54 = vrot.slane %v1220_v42, 2  ;;  %v1119_v60 = vunpack.c.l.bf16 %v1107_v45  ;;  %v1214_v18 = vrot.slane %v1213_v53, 1  ;;  %v1235_v6 = vsel %vm446_vm5, %v1198_v5, 0.0  ;;  %v1166_v26 = vpop.permute.xlu1 %1165  ;;  %v1162_v28 = vpop.permute.xlu0 %1161 }
 0x2ef   : > { %v1099_v21 = vpack.c.bf16 %v1098_v48, %v1097_v47  ;;  %1101 = vst.msk [vmem:[#allocation2] sm:$0xff] %vm446_vm5, %v1097_v47  ;;  %1102 = vst.msk [vmem:[#allocation2 + $0x8] sm:$0xff] %vm446_vm5, %v1098_v48  ;;  %v1228_v61 = vrot.slane %v1227_v7, 4  ;;  %v1234_v9 = vsel %vm446_vm5, %v1197_v27, 0.0  ;;  %v1200_v37 = vmul.f32 %v1166_v26, %v1120_v31 }
 0x2f0   : > { %v1222_v23 = vadd.f32 %v1221_v54, %v1220_v42  ;;  %v1108_v15 = vld [vmem:[#allocation6 + $0x28] sm:$0xff]  ;;  %v1236_v63 = vadd.f32 %v1235_v6, %v1234_v9  ;;  %v1199_v30 = vmul.f32 %v1162_v28, %v1119_v60  ;;  %v1215_v52 = vadd.f32 %v1214_v18, %v1213_v53 }
 0x2f1   : > { %1100 = vst.msk [vmem:[#allocation6 + $0x38] sm:$0xff] %vm446_vm5, %v1099_v21  ;;  %v1229_v38 = vadd.f32 %v1228_v61, %v1227_v7  ;;  %v1122_v19 = vunpack.c.h.bf16 %v1108_v15  ;;  %v1121_v62 = vunpack.c.l.bf16 %v1108_v15  ;;  %v1244_v35 = vsel %vm446_vm5, %v1200_v37, 0.0 }
 0x2f2   : > { %v1223_v1 = vrot.slane %v1222_v23, 1  ;;  %v1237_v34 = vrot.slane %v1236_v63, 4  ;;  %v1243_v44 = vsel %vm446_vm5, %v1199_v30, 0.0  ;;  %v1174_v36 = vpop.permute.xlu1 %1173  ;;  %v1170_v20 = vpop.permute.xlu0 %1169 }
 0x2f3   : > { %v1230_v2 = vrot.slane %v1229_v38, 2  ;;  %v1245_v13 = vadd.f32 %v1244_v35, %v1243_v44  ;;  %v1202_v3 = vmul.f32 %v1174_v36, %v1122_v19  ;;  %v1201_v25 = vmul.f32 %v1170_v20, %v1121_v62 }
 0x2f4   : > { %v1224_v58 = vadd.f32 %v1223_v1, %v1222_v23  ;;  %v1238_v29 = vadd.f32 %v1237_v34, %v1236_v63  ;;  %v1109_v14 = vld [vmem:[#allocation6 + $0x30] sm:$0xff]  ;;  %v1582_v19 = vrot.slane %v3149_v56, %v2901_v55 }
 0x2f5   : > { %v1231_v11 = vadd.f32 %v1230_v2, %v1229_v38  ;;  %v1246_v46 = vrot.slane %v1245_v13, 4  ;;  %v1253_v40 = vsel %vm446_vm5, %v1202_v3, 0.0  ;;  %v1252_v49 = vsel %vm446_vm5, %v1201_v25, 0.0 }
 0x2f6   : > { %v1928_v39 = vsel %vm1927_vm11, %v1224_v58, %v1215_v52  ;;  %v1239_v57 = vrot.slane %v1238_v29, 2  ;;  %v1124_v43 = vunpack.c.h.bf16 %v1109_v14  ;;  %v1254_v8 = vadd.f32 %v1253_v40, %v1252_v49  ;;  %v1182_v47 = vpop.permute.xlu1 %1181  ;;  %v1178_v48 = vpop.permute.xlu0 %1177 }
 0x2f7   : > { %v1232_v22 = vrot.slane %v1231_v11, 1  ;;  %v1247_v12 = vadd.f32 %v1246_v46, %v1245_v13  ;;  %v1123_v41 = vunpack.c.l.bf16 %v1109_v14  ;;  %v1575_v13 = vcombine.high %v3149_v56, %v3149_v56 }
 0x2f8   : > { %v1240_v0 = vadd.f32 %v1239_v57, %v1238_v29  ;;  %v1110_v4 = vld [vmem:[#allocation6 + $0x38] sm:$0xff]  ;;  %v1255_v45 = vrot.slane %v1254_v8, 4  ;;  %v1204_v5 = vmul.f32 %v1182_v47, %v1124_v43  ;;  %v1586_v14 = vrot.slane %v3162_v16, %v2901_v55 }
 0x2f9   : > { %v1233_v10 = vadd.f32 %v1232_v22, %v1231_v11  ;;  %v1248_v17 = vrot.slane %v1247_v12, 2  ;;  %v1126_v7 = vunpack.c.h.bf16 %v1110_v4  ;;  %v1203_v27 = vmul.f32 %v1178_v48, %v1123_v41  ;;  %v1651_v47 = vld [vmem:[#allocation2] sm:$0xff]  ;;  %v1652_v48 = vld [vmem:[#allocation2 + $0x8] sm:$0xff] }
 0x2fa   : > { %v1241_v42 = vrot.slane %v1240_v0, 1  ;;  %v1256_v54 = vadd.f32 %v1255_v45, %v1254_v8  ;;  %v1125_v31 = vunpack.c.l.bf16 %v1110_v4  ;;  %v1262_v60 = vsel %vm446_vm5, %v1204_v5, 0.0  ;;  %v1190_v6 = vpop.permute.xlu1 %1189  ;;  %v1186_v9 = vpop.permute.xlu0 %1185 }
 0x2fb   : > { %v1930_v53 = vsel %vm1929_vm12, %v1233_v10, %v1928_v39  ;;  %v1249_v33 = vadd.f32 %v1248_v17, %v1247_v12  ;;  %v1261_v23 = vsel %vm446_vm5, %v1203_v27, 0.0  ;;  %v1206_v26 = vmul.f32 %v1190_v6, %v1126_v7  ;;  %v1654_v27 = vld [vmem:[#allocation5 + $0x8] sm:$0xff] }
 0x2fc   : > { %v1242_v59 = vadd.f32 %v1241_v42, %v1240_v0  ;;  %v1257_v61 = vrot.slane %v1256_v54, 2  ;;  %v1263_v63 = vadd.f32 %v1262_v60, %v1261_v23  ;;  %v1205_v28 = vmul.f32 %v1186_v9, %v1125_v31 }
 0x2fd   : > { %v1250_v21 = vrot.slane %v1249_v33, 1  ;;  %v1271_v30 = vsel %vm446_vm5, %v1206_v26, 0.0  ;;  %v1590_v43 = vrot.slane %v1575_v13, %v2901_v55  ;;  %v1577_v12 = vcombine.high %v3162_v16, %v3162_v16  ;;  %v1653_v16 = vld [vmem:[#allocation5] sm:$0xff] }
 0x2fe   : > { %v1932_v18 = vsel %vm1931_vm13, %v1242_v59, %v1930_v53  ;;  %v1258_v38 = vadd.f32 %v1257_v61, %v1256_v54  ;;  %v1264_v37 = vrot.slane %v1263_v63, 4  ;;  %v1270_v2 = vsel %vm446_vm5, %v1205_v28, 0.0  ;;  %v1444_v34 = vpop.permute.xlu1 %1443  ;;  %v1440_v52 = vpop.permute.xlu0 %1439 }
 0x2ff   : > { %v1251_v15 = vadd.f32 %v1250_v21, %v1249_v33  ;;  %v1272_v44 = vadd.f32 %v1271_v30, %v1270_v2  ;;  %v1620_v11 = vmul.f32 %v1582_v19, %v1444_v34  ;;  %v1619_v29 = vmul.f32 %v1582_v19, %v1440_v52  ;;  %v1664_v30 = vld [vmem:[#allocation5 + $0x10] sm:$0xff] }
 0x300   : > { %v1259_v1 = vrot.slane %v1258_v38, 1  ;;  %v1265_v35 = vadd.f32 %v1264_v37, %v1263_v63  ;;  %v1594_v59 = vrot.slane %v1577_v12, %v2901_v55  ;;  %v1656_v23 = vmul.f32 %v1654_v27, %v1652_v48 }
 0x301   : > { %v1934_v62 = vsel %vm1933_vm14, %v1251_v15, %v1932_v18  ;;  %v1273_v20 = vrot.slane %v1272_v44, 4  ;;  %v1635_v3 = vpack.c.bf16 %v1620_v11, %v1619_v29  ;;  %v1655_v18 = vmul.f32 %v1653_v16, %v1651_v47  ;;  %v1687_v47 = vld [vmem:[#allocation5 + $0x38] sm:$0xff] }
 0x302   : > { %v1260_v58 = vadd.f32 %v1259_v1, %v1258_v38  ;;  %v1266_v36 = vrot.slane %v1265_v35, 2  ;;  %v1456_v25 = vpop.permute.xlu1 %1455  ;;  %v1452_v22 = vpop.permute.xlu0 %1451  ;;  %v1598_v38 = vrot.slane %v3167_v24, %v2901_v55  ;;  %v1602_v13 = vrot.slane %v3176_v32, %v2901_v55 }
 0x303   : > { %v1274_v46 = vadd.f32 %v1273_v20, %v1272_v44  ;;  %v1622_v40 = vmul.f32 %v1586_v14, %v1456_v25  ;;  %v1621_v49 = vmul.f32 %v1586_v14, %v1452_v22  ;;  %1643 = vst.msk [vmem:[#allocation6] sm:$0xff] %vm446_vm5, %v1635_v3  ;;  %v1675_v22 = vld [vmem:[#allocation5 + $0x20] sm:$0xff] }
 0x304   : > { %v1936_v39 = vsel %vm1935_vm15, %v1260_v58, %v1934_v62  ;;  %v1267_v57 = vadd.f32 %v1266_v36, %v1265_v35  ;;  %v1665_v62 = vld [vmem:[#allocation5 + $0x18] sm:$0xff]  ;;  %v1576_v36 = vcombine.high %v3167_v24, %v3167_v24 }
 0x305   : > { %v1275_v56 = vrot.slane %v1274_v46, 2  ;;  %v1636_v0 = vpack.c.bf16 %v1622_v40, %v1621_v49 }
 0x306   : > { %v1268_v10 = vrot.slane %v1267_v57, 1  ;;  %v1468_v8 = vpop.permute.xlu1 %1467  ;;  %v1464_v4 = vpop.permute.xlu0 %1463  ;;  %v1606_v24 = vrot.slane %v1576_v36, %v2901_v55 }
 0x307   : > { %v1276_v53 = vadd.f32 %v1275_v56, %v1274_v46  ;;  %1644 = vst.msk [vmem:[#allocation6 + $0x8] sm:$0xff] %vm446_vm5, %v1636_v0  ;;  %v1624_v42 = vmul.f32 %v1590_v43, %v1468_v8  ;;  %v1623_v17 = vmul.f32 %v1590_v43, %v1464_v4  ;;  %v1578_v8 = vcombine.high %v3176_v32, %v3176_v32 }
 0x308   : > { %v1269_v41 = vadd.f32 %v1268_v10, %v1267_v57  ;;  %v1676_v57 = vld [vmem:[#allocation5 + $0x28] sm:$0xff] }
 0x309   : > { %v1277_v45 = vrot.slane %v1276_v53, 1  ;;  %v1637_v7 = vpack.c.bf16 %v1624_v42, %v1623_v17  ;;  %v1610_v32 = vrot.slane %v1578_v8, %v2901_v55 }
 0x30a   : > { %v1938_v33 = vsel %vm1937_vm0, %v1269_v41, %v1936_v39  ;;  %v1480_v54 = vpop.permute.xlu1 %1479  ;;  %v1476_v5 = vpop.permute.xlu0 %1475  ;;  %v1657_v31 = vld [vmem:[#allocation6] sm:$0xff] }
 0x30b   : > { %1645 = vst.msk [vmem:[#allocation6 + $0x10] sm:$0xff] %vm446_vm5, %v1637_v7  ;;  %v1626_v21 = vmul.f32 %v1594_v59, %v1480_v54  ;;  %v1625_v61 = vmul.f32 %v1594_v59, %v1476_v5  ;;  %v1278_v60 = vadd.f32 %v1277_v45, %v1276_v53  ;;  %v1658_v6 = vunpack.c.l.bf16 %v1657_v31  ;;  %v1686_v45 = vld [vmem:[#allocation5 + $0x30] sm:$0xff] }
 0x30c   : > { %v1659_v9 = vunpack.c.h.bf16 %v1657_v31 }
 0x30d   : > { %v1638_v15 = vpack.c.bf16 %v1626_v21, %v1625_v61  ;;  %v3340_v63 = vsel %vm1939_vm1, %v1278_v60, %v1938_v33  ;;  %v1660_v26 = vadd.f32 %v1658_v6, %v1655_v18  ;;  %v1698_v6 = vld [vmem:[#allocation5 + $0x48] sm:$0xff] }
 0x30e   : > { %v1661_v28 = vadd.f32 %v1659_v9, %v1656_v23  ;;  %v1668_v19 = vld [vmem:[#allocation6 + $0x8] sm:$0xff]  ;;  %v1492_v1 = vpop.permute.xlu1 %1491  ;;  %v1488_v37 = vpop.permute.xlu0 %1487  ;;  %v1697_v23 = vld [vmem:[#allocation5 + $0x40] sm:$0xff] }
 0x30f   : > { %v1669_v2 = vunpack.c.l.bf16 %v1668_v19  ;;  %v1670_v34 = vunpack.c.h.bf16 %v1668_v19  ;;  %1646 = vst.msk [vmem:[#allocation6 + $0x18] sm:$0xff] %vm446_vm5, %v1638_v15  ;;  %v1628_v52 = vmul.f32 %v1598_v38, %v1492_v1  ;;  %v1627_v58 = vmul.f32 %v1598_v38, %v1488_v37 }
 0x310   : > { %v1662_v35 = vpack.c.bf16 %v1661_v28, %v1660_v26  ;;  %v1666_v44 = vmul.f32 %v1664_v30, %v1660_v26  ;;  %v1667_v11 = vmul.f32 %v1665_v62, %v1661_v28 }
 0x311   : > { %v1639_v29 = vpack.c.bf16 %v1628_v52, %v1627_v58  ;;  %v1708_v58 = vld [vmem:[#allocation5 + $0x50] sm:$0xff] }
 0x312   : > { %1663 = vst.msk [vmem:[#allocation6] sm:$0xff] %vm446_vm5, %v1662_v35  ;;  %v1671_v20 = vadd.f32 %v1669_v2, %v1666_v44  ;;  %v1672_v14 = vadd.f32 %v1670_v34, %v1667_v11  ;;  %v1679_v39 = vld [vmem:[#allocation6 + $0x10] sm:$0xff]  ;;  %v1504_v3 = vpop.permute.xlu1 %1503  ;;  %v1500_v25 = vpop.permute.xlu0 %1499  ;;  %v1709_v35 = vld [vmem:[#allocation5 + $0x58] sm:$0xff] }
 0x313   : > { %v1680_v46 = vunpack.c.l.bf16 %v1679_v39  ;;  %v1681_v40 = vunpack.c.h.bf16 %v1679_v39  ;;  %1647 = vst.msk [vmem:[#allocation6 + $0x20] sm:$0xff] %vm446_vm5, %v1639_v29  ;;  %v1630_v49 = vmul.f32 %v1602_v13, %v1504_v3  ;;  %v1629_v43 = vmul.f32 %v1602_v13, %v1500_v25 }
 0x314   : > { %v1673_v10 = vpack.c.bf16 %v1672_v14, %v1671_v20  ;;  %v1677_v56 = vmul.f32 %v1675_v22, %v1671_v20  ;;  %v1678_v0 = vmul.f32 %v1676_v57, %v1672_v14 }
 0x315   : > { %v1640_v12 = vpack.c.bf16 %v1630_v49, %v1629_v43 }
 0x316   : > { %1674 = vst.msk [vmem:[#allocation6 + $0x8] sm:$0xff] %vm446_vm5, %v1673_v10  ;;  %v1682_v4 = vadd.f32 %v1680_v46, %v1677_v56  ;;  %v1683_v41 = vadd.f32 %v1681_v40, %v1678_v0  ;;  %v1690_v53 = vld [vmem:[#allocation6 + $0x18] sm:$0xff]  ;;  %v1516_v42 = vpop.permute.xlu1 %1515  ;;  %v1512_v17 = vpop.permute.xlu0 %1511  ;;  %v1719_v10 = vld [vmem:[#allocation5 + $0x60] sm:$0xff]  ;;  %v1720_v56 = vld [vmem:[#allocation5 + $0x68] sm:$0xff] }
 0x317   : > { %v1691_v48 = vunpack.c.l.bf16 %v1690_v53  ;;  %v1692_v7 = vunpack.c.h.bf16 %v1690_v53  ;;  %1648 = vst.msk [vmem:[#allocation6 + $0x28] sm:$0xff] %vm446_vm5, %v1640_v12  ;;  %v1632_v59 = vmul.f32 %v1606_v24, %v1516_v42  ;;  %v1631_v33 = vmul.f32 %v1606_v24, %v1512_v17 }
 0x318   : > { %v1684_v54 = vpack.c.bf16 %v1683_v41, %v1682_v4  ;;  %v1688_v5 = vmul.f32 %v1686_v45, %v1682_v4  ;;  %v1689_v16 = vmul.f32 %v1687_v47, %v1683_v41 }
 0x319   : > { %v1641_v27 = vpack.c.bf16 %v1632_v59, %v1631_v33  ;;  %v1743_v29 = vld [vmem:[#allocation6] sm:$0xff] }
 0x31a   : > { %1685 = vst.msk [vmem:[#allocation6 + $0x10] sm:$0xff] %vm446_vm5, %v1684_v54  ;;  %v1693_v31 = vadd.f32 %v1691_v48, %v1688_v5  ;;  %v1694_v21 = vadd.f32 %v1692_v7, %v1689_v16  ;;  %v1701_v61 = vld [vmem:[#allocation6 + $0x20] sm:$0xff]  ;;  %v1528_v60 = vpop.permute.xlu1 %1527  ;;  %v1524_v18 = vpop.permute.xlu0 %1523  ;;  %v1752_v57 = vunpack.c.h.bf16 %v1743_v29  ;;  %v1751_v46 = vunpack.c.l.bf16 %v1743_v29 }
 0x31b   : > { %v1702_v9 = vunpack.c.l.bf16 %v1701_v61  ;;  %v1703_v15 = vunpack.c.h.bf16 %v1701_v61  ;;  %1649 = vst.msk [vmem:[#allocation6 + $0x30] sm:$0xff] %vm446_vm5, %v1641_v27  ;;  %v1634_v38 = vmul.f32 %v1610_v32, %v1528_v60  ;;  %v1633_v26 = vmul.f32 %v1610_v32, %v1524_v18  ;;  %v1730_v32 = vld [vmem:[#allocation5 + $0x70] sm:$0xff] }
 0x31c   : > { %v1695_v28 = vpack.c.bf16 %v1694_v21, %v1693_v31  ;;  %v1699_v19 = vmul.f32 %v1697_v23, %v1693_v31  ;;  %v1700_v1 = vmul.f32 %v1698_v6, %v1694_v21  ;;  %v1731_v31 = vld [vmem:[#allocation5 + $0x78] sm:$0xff] }
 0x31d   : > { %v1642_v37 = vpack.c.bf16 %v1634_v38, %v1633_v26  ;;  %v1744_v52 = vld [vmem:[#allocation6 + $0x8] sm:$0xff] }
 0x31e   : > { %1696 = vst.msk [vmem:[#allocation6 + $0x18] sm:$0xff] %vm446_vm5, %v1695_v28  ;;  %v1704_v55 = vadd.f32 %v1702_v9, %v1699_v19  ;;  %v1705_v30 = vadd.f32 %v1703_v15, %v1700_v1  ;;  %v1712_v62 = vld [vmem:[#allocation6 + $0x28] sm:$0xff]  ;;  %v1774_v2 = vpop.permute.xlu1 %1773  ;;  %v1770_v34 = vpop.permute.xlu0 %1769  ;;  %v1754_v14 = vunpack.c.h.bf16 %v1744_v52  ;;  %v1753_v39 = vunpack.c.l.bf16 %v1744_v52 }
 0x31f   : > { %v1713_v44 = vunpack.c.l.bf16 %v1712_v62  ;;  %v1714_v11 = vunpack.c.h.bf16 %v1712_v62  ;;  %1650 = vst.msk [vmem:[#allocation6 + $0x38] sm:$0xff] %vm446_vm5, %v1642_v37  ;;  %v1832_v42 = vmul.f32 %v1774_v2, %v1752_v57  ;;  %v1831_v17 = vmul.f32 %v1770_v34, %v1751_v46 }
 0x320   : > { %v1706_v13 = vpack.c.bf16 %v1705_v30, %v1704_v55  ;;  %v1710_v36 = vmul.f32 %v1708_v58, %v1704_v55  ;;  %v1711_v20 = vmul.f32 %v1709_v35, %v1705_v30 }
 0x321   : > { %v1745_v43 = vld [vmem:[#allocation6 + $0x10] sm:$0xff]  ;;  %v1848_v15 = vsel %vm446_vm5, %v1832_v42, 0.0  ;;  %v1847_v38 = vsel %vm446_vm5, %v1831_v17, 0.0 }
 0x322   : > { %1707 = vst.msk [vmem:[#allocation6 + $0x20] sm:$0xff] %vm446_vm5, %v1706_v13  ;;  %v1715_v3 = vadd.f32 %v1713_v44, %v1710_v36  ;;  %v1716_v25 = vadd.f32 %v1714_v11, %v1711_v20  ;;  %v1723_v22 = vld [vmem:[#allocation6 + $0x30] sm:$0xff]  ;;  %v1782_v40 = vpop.permute.xlu1 %1781  ;;  %v1778_v49 = vpop.permute.xlu0 %1777  ;;  %v1756_v45 = vunpack.c.h.bf16 %v1745_v43  ;;  %v1755_v47 = vunpack.c.l.bf16 %v1745_v43 }
 0x323   : > { %v1724_v0 = vunpack.c.l.bf16 %v1723_v22  ;;  %v1725_v12 = vunpack.c.h.bf16 %v1723_v22  ;;  %v1834_v24 = vmul.f32 %v1782_v40, %v1754_v14  ;;  %v1833_v8 = vmul.f32 %v1778_v49, %v1753_v39 }
 0x324   : > { %v1717_v4 = vpack.c.bf16 %v1716_v25, %v1715_v3  ;;  %v1721_v41 = vmul.f32 %v1719_v10, %v1715_v3  ;;  %v1722_v53 = vmul.f32 %v1720_v56, %v1716_v25  ;;  %v1849_v44 = vadd.f32 %v1848_v15, %v1847_v38 }
 0x325   : > { %v1857_v33 = vsel %vm446_vm5, %v1834_v24, 0.0  ;;  %v1856_v54 = vsel %vm446_vm5, %v1833_v8, 0.0  ;;  %v1746_v27 = vld [vmem:[#allocation6 + $0x18] sm:$0xff] }
 0x326   : > { %1718 = vst.msk [vmem:[#allocation6 + $0x28] sm:$0xff] %vm446_vm5, %v1717_v4  ;;  %v1726_v48 = vadd.f32 %v1724_v0, %v1721_v41  ;;  %v1727_v7 = vadd.f32 %v1725_v12, %v1722_v53  ;;  %v1734_v59 = vld [vmem:[#allocation6 + $0x38] sm:$0xff]  ;;  %v1790_v5 = vpop.permute.xlu1 %1789  ;;  %v1786_v16 = vpop.permute.xlu0 %1785  ;;  %v1758_v19 = vunpack.c.h.bf16 %v1746_v27  ;;  %v1858_v55 = vadd.f32 %v1857_v33, %v1856_v54 }
 0x327   : > { %v1735_v21 = vunpack.c.l.bf16 %v1734_v59  ;;  %v1736_v61 = vunpack.c.h.bf16 %v1734_v59  ;;  %v1836_v60 = vmul.f32 %v1790_v5, %v1756_v45  ;;  %v1835_v18 = vmul.f32 %v1786_v16, %v1755_v47 }
 0x328   : > { %v1728_v23 = vpack.c.bf16 %v1727_v7, %v1726_v48  ;;  %v1732_v6 = vmul.f32 %v1730_v32, %v1726_v48  ;;  %v1733_v9 = vmul.f32 %v1731_v31, %v1727_v7  ;;  %v1757_v58 = vunpack.c.l.bf16 %v1746_v27 }
 0x329   : > { %v1866_v26 = vsel %vm446_vm5, %v1836_v60, 0.0  ;;  %v1865_v28 = vsel %vm446_vm5, %v1835_v18, 0.0  ;;  %v1747_v2 = vld [vmem:[#allocation6 + $0x20] sm:$0xff]  ;;  %v1859_v20 = vrot.slane %v1858_v55, 4  ;;  %v1850_v40 = vrot.slane %v1849_v44, 4 }
 0x32a   : > { %1729 = vst.msk [vmem:[#allocation6 + $0x30] sm:$0xff] %vm446_vm5, %v1728_v23  ;;  %v1737_v1 = vadd.f32 %v1735_v21, %v1732_v6  ;;  %v1738_v37 = vadd.f32 %v1736_v61, %v1733_v9  ;;  %v1798_v30 = vpop.permute.xlu1 %1797  ;;  %v1794_v62 = vpop.permute.xlu0 %1793  ;;  %v1867_v34 = vadd.f32 %v1866_v26, %v1865_v28  ;;  %v1760_v13 = vunpack.c.h.bf16 %v1747_v2 }
 0x32b   : > { %v1838_v52 = vmul.f32 %v1798_v30, %v1758_v19  ;;  %v1837_v29 = vmul.f32 %v1794_v62, %v1757_v58  ;;  %v1759_v36 = vunpack.c.l.bf16 %v1747_v2  ;;  %v1860_v12 = vadd.f32 %v1859_v20, %v1858_v55 }
 0x32c   : > { %v1739_v35 = vpack.c.bf16 %v1738_v37, %v1737_v1  ;;  %1741 = vst.msk [vmem:[#allocation2] sm:$0xff] %vm446_vm5, %v1737_v1  ;;  %1742 = vst.msk [vmem:[#allocation2 + $0x8] sm:$0xff] %vm446_vm5, %v1738_v37  ;;  %v1868_v25 = vrot.slane %v1867_v34, 4  ;;  %v1851_v47 = vadd.f32 %v1850_v40, %v1849_v44 }
 0x32d   : > { %v1875_v11 = vsel %vm446_vm5, %v1838_v52, 0.0  ;;  %v1748_v3 = vld [vmem:[#allocation6 + $0x28] sm:$0xff]  ;;  %v1874_v22 = vsel %vm446_vm5, %v1837_v29, 0.0  ;;  %v1861_v27 = vrot.slane %v1860_v12, 2 }
 0x32e   : > { %1740 = vst.msk [vmem:[#allocation6 + $0x38] sm:$0xff] %vm446_vm5, %v1739_v35  ;;  %v1806_v14 = vpop.permute.xlu1 %1805  ;;  %v1802_v39 = vpop.permute.xlu0 %1801  ;;  %v1876_v49 = vadd.f32 %v1875_v11, %v1874_v22  ;;  %v1762_v56 = vunpack.c.h.bf16 %v1748_v3  ;;  %v1761_v0 = vunpack.c.l.bf16 %v1748_v3  ;;  %v1869_v42 = vadd.f32 %v1868_v25, %v1867_v34 }
 0x32f   : > { %v1840_v57 = vmul.f32 %v1806_v14, %v1760_v13  ;;  %v1839_v46 = vmul.f32 %v1802_v39, %v1759_v36  ;;  %v1852_v6 = vrot.slane %v1851_v47, 2  ;;  %v1862_v37 = vadd.f32 %v1861_v27, %v1860_v12 }
 0x330   : > { %v1877_v24 = vrot.slane %v1876_v49, 4  ;;  %v1870_v60 = vrot.slane %v1869_v42, 2 }
 0x331   : > { %v1884_v43 = vsel %vm446_vm5, %v1840_v57, 0.0  ;;  %v1883_v10 = vsel %vm446_vm5, %v1839_v46, 0.0  ;;  %v1749_v53 = vld [vmem:[#allocation6 + $0x30] sm:$0xff]  ;;  %v1853_v35 = vadd.f32 %v1852_v6, %v1851_v47  ;;  %v1863_v14 = vrot.slane %v1862_v37, 1 }
 0x332   : > { %v1885_v8 = vadd.f32 %v1884_v43, %v1883_v10  ;;  %v1814_v4 = vpop.permute.xlu1 %1813  ;;  %v1810_v41 = vpop.permute.xlu0 %1809  ;;  %v1878_v48 = vadd.f32 %v1877_v24, %v1876_v49  ;;  %v1764_v54 = vunpack.c.h.bf16 %v1749_v53  ;;  %v1763_v5 = vunpack.c.l.bf16 %v1749_v53 }
 0x333   : > { %v1842_v17 = vmul.f32 %v1814_v4, %v1762_v56  ;;  %v1841_v45 = vmul.f32 %v1810_v41, %v1761_v0  ;;  %v1871_v34 = vadd.f32 %v1870_v60, %v1869_v42  ;;  %v1854_v57 = vrot.slane %v1853_v35, 1 }
 0x334   : > { %v1886_v7 = vrot.slane %v1885_v8, 4  ;;  %v1879_v9 = vrot.slane %v1878_v48, 2  ;;  %v1864_v10 = vadd.f32 %v1863_v14, %v1862_v37 }
 0x335   : > { %v1893_v59 = vsel %vm446_vm5, %v1842_v17, 0.0  ;;  %v1892_v33 = vsel %vm446_vm5, %v1841_v45, 0.0  ;;  %v1750_v16 = vld [vmem:[#allocation6 + $0x38] sm:$0xff]  ;;  %v1872_v22 = vrot.slane %v1871_v34, 1 }
 0x336   : > { %v1887_v32 = vadd.f32 %v1886_v7, %v1885_v8  ;;  %v1894_v31 = vadd.f32 %v1893_v59, %v1892_v33  ;;  %v1822_v21 = vpop.permute.xlu1 %1821  ;;  %v1818_v61 = vpop.permute.xlu0 %1817  ;;  %v1766_v38 = vunpack.c.h.bf16 %v1750_v16  ;;  %v1765_v1 = vunpack.c.l.bf16 %v1750_v16  ;;  %v2220_v33 = vld [vmem:[%s3469_s6] ss:$0 sm:$0xff] }
 0x337   : > { %v1844_v18 = vmul.f32 %v1822_v21, %v1764_v54  ;;  %v1843_v23 = vmul.f32 %v1818_v61, %v1763_v5  ;;  %v1880_v44 = vadd.f32 %v1879_v9, %v1878_v48  ;;  %v1873_v24 = vadd.f32 %v1872_v22, %v1871_v34 }
 0x338   : > { %v1895_v15 = vrot.slane %v1894_v31, 4  ;;  %v1888_v26 = vrot.slane %v1887_v32, 2  ;;  %v1855_v8 = vadd.f32 %v1854_v57, %v1853_v35  ;;  %v1965_v21 = vmul.f32 %v2220_v33, %v2891_v50 }
 0x339   : > { %v1902_v28 = vsel %vm446_vm5, %v1844_v18, 0.0  ;;  %v1901_v19 = vsel %vm446_vm5, %v1843_v23, 0.0  ;;  %v1881_v46 = vrot.slane %v1880_v44, 1 }
 0x33a   : > { %v1896_v55 = vadd.f32 %v1895_v15, %v1894_v31  ;;  %v1903_v30 = vadd.f32 %v1902_v28, %v1901_v19  ;;  %v1830_v62 = vpop.permute.xlu1 %1829  ;;  %v1826_v2 = vpop.permute.xlu0 %1825  ;;  %v1889_v13 = vadd.f32 %v1888_v26, %v1887_v32  ;;  %v1950_v17 = vsel %vm1927_vm11, %v1864_v10, %v1855_v8 }
 0x33b   : > { %v1846_v52 = vmul.f32 %v1830_v62, %v1766_v38  ;;  %v1845_v58 = vmul.f32 %v1826_v2, %v1765_v1  ;;  %v1882_v4 = vadd.f32 %v1881_v46, %v1880_v44  ;;  %v1951_v48 = vsel %vm1929_vm12, %v1873_v24, %v1950_v17 }
 0x33c   : > { %v1897_v11 = vrot.slane %v1896_v55, 2  ;;  %v1904_v29 = vrot.slane %v1903_v30, 4  ;;  %v1890_v43 = vrot.slane %v1889_v13, 1  ;;  %v1966_v32 = vmul.f32 %v2220_v33, %v2893_v51 }
 0x33d   : > { %v1911_v36 = vsel %vm446_vm5, %v1846_v52, 0.0  ;;  %v1910_v20 = vsel %vm446_vm5, %v1845_v58, 0.0  ;;  %v1952_v54 = vsel %vm1931_vm13, %v1882_v4, %v1951_v48  ;;  %v1967_v23 = vadd.f32 %v1965_v21, %v3340_v63 }
 0x33e   : > { %v1898_v39 = vadd.f32 %v1897_v11, %v1896_v55  ;;  %v1905_v3 = vadd.f32 %v1904_v29, %v1903_v30  ;;  %v1912_v25 = vadd.f32 %v1911_v36, %v1910_v20  ;;  %v1891_v42 = vadd.f32 %v1890_v43, %v1889_v13  ;;  %v1986_v60 = vpop.permute.xlu0 %1985  ;;  %v1988_v6 = vpop.permute.xlu1 %1987 }
 0x33f   : > { %v1991_v15 = vmul.f32 %v1986_v60, %v1967_v23 }
 0x340   : > { %v1906_v40 = vrot.slane %v1905_v3, 2  ;;  %v1913_v49 = vrot.slane %v1912_v25, 4  ;;  %v1899_v56 = vrot.slane %v1898_v39, 1  ;;  %v1953_v5 = vsel %vm1933_vm14, %v1891_v42, %v1952_v54 }
 0x342   : > { %v1907_v0 = vadd.f32 %v1906_v40, %v1905_v3  ;;  %v1914_v12 = vadd.f32 %v1913_v49, %v1912_v25  ;;  %v1900_v45 = vadd.f32 %v1899_v56, %v1898_v39 }
 0x344   : > { %v1908_v41 = vrot.slane %v1907_v0, 1  ;;  %v1915_v53 = vrot.slane %v1914_v12, 2  ;;  %v1954_v27 = vsel %vm1935_vm15, %v1900_v45, %v1953_v5 }
 0x346   : > { %v1916_v47 = vadd.f32 %v1915_v53, %v1914_v12  ;;  %v1909_v7 = vadd.f32 %v1908_v41, %v1907_v0 }
 0x348   : > { %v1917_v59 = vrot.slane %v1916_v47, 1  ;;  %v1955_v31 = vsel %vm1937_vm0, %v1909_v7, %v1954_v27 }
 0x34a   : > { %v1918_v16 = vadd.f32 %v1917_v59, %v1916_v47 }
 0x34c   : > { %v1956_v61 = vsel %vm1939_vm1, %v1918_v16, %v1955_v31 }
 0x34d   : > { %v1968_v18 = vadd.f32 %v1966_v32, %v1956_v61 }
 0x34f   : > { %v1992_v9 = vmul.f32 %v1988_v6, %v1968_v18 }
 0x351   : > { %v1993_v38 = vpack.c.bf16 %v1992_v9, %v1991_v15 }
 0x353   : > { %2274 = vmatmul.mubr.msk.bf16.vlgmr.msra.gmra.mrb[4].mxu0 %vm446_vm5, %v1993_v38 }
 0x426   : > { %v2063_v50 = vpop.f32.mrb[4].mxu0 }
 0x427   : > { %2070 = vst.msk [vmem:[%s2850_s11] sm:$0xff] %vm398_vm3, %v2063_v50  ;;  %v2275_v51 = vpop.f32.mrb[5].mxu0 }
 0x428   : > { %v2066_v63 = vpop.f32.mrb[6].mxu0 }
 0x429   : > { %2071 = vst.msk [vmem:[%s2850_s11 + $0x8] sm:$0xff] %vm398_vm3, %v2066_v63  ;;  %v2276_v26 = vpop.f32.mrb[7].mxu0 }
 0x42a   : > { %2548 = shalt.err (!%p2545_p11)
}
 0x42b   : > { %s2549_s25 = scalar_lea.hbm %s3401_s29, 256  ;;  %s2553_s18 = scalar_lea.hbm %s3471_s8, 1024 }
 0x42c   : > { %p2550_p13 = scmp.ne.s32.totalorder %s3401_s29, %s2549_s25  ;;  %p2554_p0 = scmp.lt.u32.totalorder %s3401_s29, %s3471_s8 }
 0x42d   : > { %p2555_p2 = scmp.lt.u32.totalorder %s2553_s18, %s2549_s25  ;;  %p2557_p12 = scmp.lt.u32.totalorder %s2549_s25, %s3401_s29 }
 0x42e   : > { %p2551_p3 = pnand %p2550_p13, %p3498_p1 }
 0x42f   : > { %p2556_p10 = por %p2555_p2, %p2554_p0 }
 0x430   : > { %p2552_p8 = pneg %p2551_p3 }
 0x431   : > { %p2558_p4 = por %p2557_p12, %p2556_p10 }
 0x433   : > { %p2559_p5 = pnand %p2558_p4, %p2552_p8 }
 0x435   : > { %2562 = shalt.err (!%p2559_p5)
}
 0x436   : > { %s2651_s21 = smov 128   ;;  %s2652_s13 = smov 8  }
 0x437   : > { %2285 = dma.vmem_to_hbm [thread:$0]  (%p3498_p1), %s3403_s17, 256, %s3401_s29, %s3411_s9, %s2651_s21, %s2651_s21, %s2652_s13  }
 0x438 PF: > { %s3499_s24 = sld [smem:[#allocation16_spill]]  ;;  %s3500_s22 = sld [smem:[#allocation22_spill]] }
 0x439   : > { %p2302_p6 = scmp.ge.s32.totalorder %s2637_s12, 2 }
 0x43e   : > { %s2103_s26 = sand.u32 1, %s3499_s24   ;;  %p3501_p7 = scmp.ne.s32.totalorder %s3500_s22, 0 }
 0x43f   : > { %s2104_s14 = scalar_lea.sflag [#allocation9], %s2103_s26 }
 0x440   : > { %p2295_p9 = pnand %p2302_p6, %p3501_p7 }
 0x442   : > { %2604 = dma.done.wait (!%p2295_p9), %s2104_s14, 256  }
 0x443   : > { %2606 = vsyncadd (!%p2295_p9), %s2104_s14, 4294967040  ;;  %s23_s12 = sadd.s32 1, %s2637_s12   ;;  %s3502_s23 = sld [smem:[#allocation17_spill]] }
 0x444   : > { %p20_p11 = scmp.ge.s32.totalorder %s23_s12, 6   ;;  %s3503_s29 = sld [smem:[#allocation23_spill]] }
 0x445   : > { %s3504_s30 = sld [smem:[#allocation18_spill]]  ;;  %s3505_s9 = sld [smem:[#allocation19_spill]] }
 0x446   : > { %s3506_s10 = sld [smem:[#allocation20_spill]]  ;;  %s3507_s11 = sld [smem:[#allocation21_spill]] }
 0x447   : > { %s3508_s27 = smov %s2613_s28  ;;  %22 = sbr.rel (!%p20_p11) target bundleno = 7 (0x7), region = 114 }
 0x449   : > { %s3509_s28 = smov %s3502_s23 }
 0x44e   :  { %2109 = vsyncpa [#allocation8], 1 }
 0x44f   :  { %2111 = vsyncpa [#allocation8 + $0x1], 1 }
 0x450   :  { %2112 = vsyncpa [#allocation11], 1 }
 0x451   :  { %2113 = vsyncpa [#allocation9], 1 }
 0x452   :  { %2115 = vsyncpa [#allocation9 + $0x1], 1 }

</bundles_post_ra>
